<compile_context>
chip_gen: v5e
topology: v5e:2x2
jax: 0.10.0
libtpu: 0.0.40
codegen_flags: <defaults>
</compile_context>

<pallas_src>
import math

import jax
import jax.numpy as jnp
from jax.experimental import pallas as pl
from jax.experimental.pallas import tpu as pltpu  # noqa: F401  (TPU backend)

# ---------------- model hyper-parameters (small, forward-consistent) ---------
B = 2          # batch
S = 8          # sequence length (rounds * stabilizers)
D = 32         # d_model
H = 4          # nhead
HD = D // H    # head dim
DFF = 64       # dim_feedforward
NUM_LAYERS = 2
LN_EPS = 1e-5

_SMALL_W = 128  # lane-padded width of the packed small-parameter slab
# rows in the packed (8, 128) small-parameter slab
_R_BQKV, _R_BO, _R_B1, _R_B2, _R_LN1G, _R_LN1B, _R_LN2G, _R_LN2B = range(8)


# ---------------------------- Pallas kernel ----------------------------------
def _layernorm(x, gamma, beta, eps):
    mu = jnp.mean(x, axis=-1, keepdims=True)
    xc = x - mu
    var = jnp.mean(xc * xc, axis=-1, keepdims=True)
    inv = jax.lax.rsqrt(var + eps)
    return xc * inv * gamma + beta


def qec_encoder_kernel(x_ref, wqkv_ref, wo_ref, w1_ref, w2_ref, small_ref,
                       out_ref):
    # One program handles the full (B, S, D) activation and all layers.
    x = x_ref[...].astype(jnp.float32).reshape(B * S, D)       # (BS, D)
    scale = 1.0 / math.sqrt(HD)

    for l in range(NUM_LAYERS):                                 # static unroll
        sm = small_ref[l]                                       # (8, 128)
        bqkv = sm[_R_BQKV:_R_BQKV + 1, :3 * D]                  # (1, 3D)
        bo   = sm[_R_BO:_R_BO + 1, :D]
        b1   = sm[_R_B1:_R_B1 + 1, :DFF]
        b2   = sm[_R_B2:_R_B2 + 1, :D]
        ln1g = sm[_R_LN1G:_R_LN1G + 1, :D]
        ln1b = sm[_R_LN1B:_R_LN1B + 1, :D]
        ln2g = sm[_R_LN2G:_R_LN2G + 1, :D]
        ln2b = sm[_R_LN2B:_R_LN2B + 1, :D]

        # --- fused Q/K/V projection (one wide matmul) ------------------------
        qkv = jnp.dot(x, wqkv_ref[l],
                      preferred_element_type=jnp.float32) + bqkv  # (BS, 3D)
        q3 = qkv[:, 0:D].reshape(B, S, D)
        k3 = qkv[:, D:2 * D].reshape(B, S, D)
        v3 = qkv[:, 2 * D:3 * D].reshape(B, S, D)

        # --- multi-head self-attention, batched over B per head --------------
        heads = []
        for h in range(H):                                      # static unroll
            sl = slice(h * HD, (h + 1) * HD)
            qh, kh, vh = q3[:, :, sl], k3[:, :, sl], v3[:, :, sl]   # (B, S, HD)
            s = jnp.einsum('bqd,bkd->bqk', qh, kh,
                           preferred_element_type=jnp.float32) * scale
            # no src_mask / key_padding_mask / causal mask (all None/False here)
            s = s - jnp.max(s, axis=-1, keepdims=True)
            p = jnp.exp(s)
            p = p * pl.reciprocal(jnp.sum(p, axis=-1, keepdims=True),
                                  approx=True)
            heads.append(jnp.einsum('bqk,bkd->bqd', p, vh,
                                    preferred_element_type=jnp.float32))
        ctx = jnp.concatenate(heads, axis=-1).reshape(B * S, D)  # (BS, D)

        attn = jnp.dot(ctx, wo_ref[l],
                       preferred_element_type=jnp.float32) + bo

        # residual + LayerNorm 1 (post-norm; dropout = identity at inference)
        x1 = _layernorm(x + attn, ln1g, ln1b, LN_EPS)

        # --- feed-forward (ReLU) ---------------------------------------------
        h1 = jnp.dot(x1, w1_ref[l], preferred_element_type=jnp.float32) + b1
        h1 = jnp.maximum(h1, 0.0)
        ff = jnp.dot(h1, w2_ref[l], preferred_element_type=jnp.float32) + b2

        # residual + LayerNorm 2
        x = _layernorm(x1 + ff, ln2g, ln2b, LN_EPS)

    out_ref[...] = x.reshape(B, S, D).astype(out_ref.dtype)


# ---------------------------- wrapper -----------------------------------------
def pack_layer_params(layer_params_list):
    """Stack per-layer weights and pack the tiny vectors into one slab/layer."""
    wqkv = jnp.stack([jnp.concatenate([p["wq"], p["wk"], p["wv"]], axis=1)
                      for p in layer_params_list])              # (L, D, 3D)
    wo = jnp.stack([p["wo"] for p in layer_params_list])        # (L, D, D)
    w1 = jnp.stack([p["w1"] for p in layer_params_list])        # (L, D, DFF)
    w2 = jnp.stack([p["w2"] for p in layer_params_list])        # (L, DFF, D)

    def row(v):
        v = v.reshape(-1)
        return jnp.pad(v, (0, _SMALL_W - v.shape[0]))

    small = jnp.stack([
        jnp.stack([
            row(jnp.concatenate([p["bq"], p["bk"], p["bv"]], axis=1)),
            row(p["bo"]), row(p["b1"]), row(p["b2"]),
            row(p["ln1g"]), row(p["ln1b"]), row(p["ln2g"]), row(p["ln2b"]),
        ]) for p in layer_params_list])                          # (L, 8, 128)
    return wqkv, wo, w1, w2, small


def qec_spacetime_encoder(x, layer_params_list):
    """Forward of QecSpaceTimeEncoder: all layers fused in one pallas_call."""
    wqkv, wo, w1, w2, small = pack_layer_params(layer_params_list)
    return pl.pallas_call(
        qec_encoder_kernel,
        out_shape=jax.ShapeDtypeStruct((B, S, D), x.dtype),
        # no grid / no BlockSpecs: one program, whole (tiny) arrays in VMEM
    )(x, wqkv, wo, w1, w2, small)


# ---------------------------- pure-JAX reference -------------------------------
def _ref_layernorm(x, gamma, beta, eps=LN_EPS):
    mu = jnp.mean(x, axis=-1, keepdims=True)
    var = jnp.mean((x - mu) ** 2, axis=-1, keepdims=True)
    return (x - mu) * jax.lax.rsqrt(var + eps) * gamma + beta


def ref_forward(x, layer_params_list):
    for p in layer_params_list:
        q = x @ p["wq"] + p["bq"]
        k = x @ p["wk"] + p["bk"]
        v = x @ p["wv"] + p["bv"]

        def split(t):
            return t.reshape(B, S, H, HD).transpose(0, 2, 1, 3)  # (B,H,S,HD)

        qh, kh, vh = split(q), split(k), split(v)
        s = jnp.einsum('bhqd,bhkd->bhqk', qh, kh) / math.sqrt(HD)
        a = jax.nn.softmax(s, axis=-1)
        ctx = jnp.einsum('bhqk,bhkd->bhqd', a, vh)
        ctx = ctx.transpose(0, 2, 1, 3).reshape(B, S, D)
        attn = ctx @ p["wo"] + p["bo"]
        x1 = _ref_layernorm(x + attn, p["ln1g"], p["ln1b"])
        h1 = jax.nn.relu(x1 @ p["w1"] + p["b1"])
        ff = h1 @ p["w2"] + p["b2"]
        x = _ref_layernorm(x1 + ff, p["ln2g"], p["ln2b"])
    return x


# ---------------------------- parameter init ----------------------------------
def init_layer_params(key):
    ks = jax.random.split(key, 12)

    def lin(k, fan_in, shape):
        bound = 1.0 / math.sqrt(fan_in)
        return jax.random.uniform(k, shape, jnp.float32, -bound, bound)

    return {
        "wq": lin(ks[0], D, (D, D)),    "bq": lin(ks[1], D, (1, D)),
        "wk": lin(ks[2], D, (D, D)),    "bk": lin(ks[3], D, (1, D)),
        "wv": lin(ks[4], D, (D, D)),    "bv": lin(ks[5], D, (1, D)),
        "wo": lin(ks[6], D, (D, D)),    "bo": lin(ks[7], D, (1, D)),
        "w1": lin(ks[8], D, (D, DFF)),  "b1": lin(ks[9], D, (1, DFF)),
        "w2": lin(ks[10], DFF, (DFF, D)), "b2": lin(ks[11], DFF, (1, D)),
        "ln1g": jnp.ones((1, D), jnp.float32), "ln1b": jnp.zeros((1, D), jnp.float32),
        "ln2g": jnp.ones((1, D), jnp.float32), "ln2b": jnp.zeros((1, D), jnp.float32),
    }


# ---------------------------- main --------------------------------------------
if __name__ == "__main__":
    root = jax.random.PRNGKey(0)
    k_in, *k_layers = jax.random.split(root, 1 + NUM_LAYERS)

    src = jax.random.normal(k_in, (B, S, D), jnp.float32)
    layer_params = [init_layer_params(k) for k in k_layers]

    out = qec_spacetime_encoder(src, layer_params)
    out = jax.block_until_ready(out)

    assert out.shape == (B, S, D) and out.dtype == jnp.float32
    assert bool(jnp.all(jnp.isfinite(out)))

    ref = ref_forward(src, layer_params)
    err = float(jnp.max(jnp.abs(out - ref)))
    assert err < 1e-2, f"mismatch vs pure-JAX reference: max abs err = {err}"

    print("KERNEL_OK")
</pallas_src>

<mosaic_0001>
module attributes {stable_mosaic.version = 11 : i64} {
  func.func @qec_encoder_kernel(%arg0: memref<2x8x32xf32, #tpu.memory_space<vmem>>, %arg1: memref<2x32x96xf32, #tpu.memory_space<vmem>>, %arg2: memref<2x32x32xf32, #tpu.memory_space<vmem>>, %arg3: memref<2x32x64xf32, #tpu.memory_space<vmem>>, %arg4: memref<2x64x32xf32, #tpu.memory_space<vmem>>, %arg5: memref<2x8x128xf32, #tpu.memory_space<vmem>>, %arg6: memref<2x8x32xf32, #tpu.memory_space<vmem>>) attributes {dimension_semantics = [], scalar_prefetch = 0 : i64, scratch_operands = 0 : i64, tpu.core_type = #tpu.core_type<tc>} {
    %c0 = arith.constant 0 : index
    %c0_0 = arith.constant 0 : index
    %c0_1 = arith.constant 0 : index
    %0 = vector.load %arg0[%c0, %c0_0, %c0_1] : memref<2x8x32xf32, #tpu.memory_space<vmem>>, vector<2x8x32xf32>
    %1 = vector.shape_cast %0 : vector<2x8x32xf32> to vector<16x32xf32>
    %c0_2 = arith.constant 0 : index
    %c0_3 = arith.constant 0 : index
    %c0_4 = arith.constant 0 : index
    %2 = vector.load %arg5[%c0_2, %c0_3, %c0_4] : memref<2x8x128xf32, #tpu.memory_space<vmem>>, vector<1x8x128xf32>
    %3 = vector.shape_cast %2 : vector<1x8x128xf32> to vector<8x128xf32>
    %4 = vector.extract_strided_slice %3 {offsets = [0, 0], sizes = [1, 96], strides = [1, 1]} : vector<8x128xf32> to vector<1x96xf32>
    %5 = vector.extract_strided_slice %3 {offsets = [1, 0], sizes = [1, 32], strides = [1, 1]} : vector<8x128xf32> to vector<1x32xf32>
    %6 = vector.extract_strided_slice %3 {offsets = [2, 0], sizes = [1, 64], strides = [1, 1]} : vector<8x128xf32> to vector<1x64xf32>
    %7 = vector.extract_strided_slice %3 {offsets = [3, 0], sizes = [1, 32], strides = [1, 1]} : vector<8x128xf32> to vector<1x32xf32>
    %8 = vector.extract_strided_slice %3 {offsets = [4, 0], sizes = [1, 32], strides = [1, 1]} : vector<8x128xf32> to vector<1x32xf32>
    %9 = vector.extract_strided_slice %3 {offsets = [5, 0], sizes = [1, 32], strides = [1, 1]} : vector<8x128xf32> to vector<1x32xf32>
    %10 = vector.extract_strided_slice %3 {offsets = [6, 0], sizes = [1, 32], strides = [1, 1]} : vector<8x128xf32> to vector<1x32xf32>
    %11 = vector.extract_strided_slice %3 {offsets = [7, 0], sizes = [1, 32], strides = [1, 1]} : vector<8x128xf32> to vector<1x32xf32>
    %c0_5 = arith.constant 0 : index
    %c0_6 = arith.constant 0 : index
    %c0_7 = arith.constant 0 : index
    %12 = vector.load %arg1[%c0_5, %c0_6, %c0_7] : memref<2x32x96xf32, #tpu.memory_space<vmem>>, vector<1x32x96xf32>
    %13 = vector.shape_cast %12 : vector<1x32x96xf32> to vector<32x96xf32>
    %cst = arith.constant dense<0.000000e+00> : vector<16x96xf32>
    %14 = tpu.matmul %1, %13, %cst {dimension_numbers = #tpu.dot_dimension_numbers<[1], [0], [0], [1], [0, 0, 1, 1], [], []>} : vector<16x32xf32>, vector<32x96xf32>, vector<16x96xf32> -> vector<16x96xf32>
    %15 = vector.broadcast %4 : vector<1x96xf32> to vector<16x96xf32>
    %16 = arith.addf %14, %15 : vector<16x96xf32>
    %17 = vector.extract_strided_slice %16 {offsets = [0, 0], sizes = [16, 32], strides = [1, 1]} : vector<16x96xf32> to vector<16x32xf32>
    %18 = vector.shape_cast %17 : vector<16x32xf32> to vector<2x8x32xf32>
    %19 = vector.extract_strided_slice %16 {offsets = [0, 32], sizes = [16, 32], strides = [1, 1]} : vector<16x96xf32> to vector<16x32xf32>
    %20 = vector.shape_cast %19 : vector<16x32xf32> to vector<2x8x32xf32>
    %21 = vector.extract_strided_slice %16 {offsets = [0, 64], sizes = [16, 32], strides = [1, 1]} : vector<16x96xf32> to vector<16x32xf32>
    %22 = vector.shape_cast %21 : vector<16x32xf32> to vector<2x8x32xf32>
    %23 = vector.extract_strided_slice %18 {offsets = [0, 0, 0], sizes = [2, 8, 8], strides = [1, 1, 1]} : vector<2x8x32xf32> to vector<2x8x8xf32>
    %24 = vector.extract_strided_slice %20 {offsets = [0, 0, 0], sizes = [2, 8, 8], strides = [1, 1, 1]} : vector<2x8x32xf32> to vector<2x8x8xf32>
    %25 = vector.extract_strided_slice %22 {offsets = [0, 0, 0], sizes = [2, 8, 8], strides = [1, 1, 1]} : vector<2x8x32xf32> to vector<2x8x8xf32>
    "tpu.trace_start"() <{level = 10 : i32, message = "bqd,bkd->bqk"}> : () -> ()
    %cst_8 = arith.constant dense<0.000000e+00> : vector<2x8x8xf32>
    %26 = tpu.matmul %23, %24, %cst_8 {dimension_numbers = #tpu.dot_dimension_numbers<[2], [2], [1], [1], [0, 0, 0, 1, 1, 1], [0], [0]>} : vector<2x8x8xf32>, vector<2x8x8xf32>, vector<2x8x8xf32> -> vector<2x8x8xf32>
    "tpu.trace_stop"() : () -> ()
    %cst_9 = arith.constant 0.353553385 : f32
    %27 = vector.broadcast %cst_9 : f32 to vector<2x8x8xf32>
    %28 = arith.mulf %26, %27 : vector<2x8x8xf32>
    %cst_10 = arith.constant dense<0xFF800000> : vector<2x8xf32>
    %29 = vector.multi_reduction <maximumf>, %28, %cst_10 [2] : vector<2x8x8xf32> to vector<2x8xf32>
    %30 = vector.shape_cast %29 : vector<2x8xf32> to vector<2x8x1xf32>
    %31 = vector.broadcast %30 : vector<2x8x1xf32> to vector<2x8x8xf32>
    %32 = arith.subf %28, %31 : vector<2x8x8xf32>
    %33 = math.exp %32 : vector<2x8x8xf32>
    %cst_11 = arith.constant dense<0.000000e+00> : vector<2x8xf32>
    %34 = vector.multi_reduction <add>, %33, %cst_11 [2] : vector<2x8x8xf32> to vector<2x8xf32>
    %35 = vector.shape_cast %34 : vector<2x8xf32> to vector<2x8x1xf32>
    %36 = tpu.reciprocal %35 {approx = true} : vector<2x8x1xf32> -> vector<2x8x1xf32>
    %37 = vector.broadcast %36 : vector<2x8x1xf32> to vector<2x8x8xf32>
    %38 = arith.mulf %33, %37 : vector<2x8x8xf32>
    "tpu.trace_start"() <{level = 10 : i32, message = "bqk,bkd->bqd"}> : () -> ()
    %cst_12 = arith.constant dense<0.000000e+00> : vector<2x8x8xf32>
    %39 = tpu.matmul %38, %25, %cst_12 {dimension_numbers = #tpu.dot_dimension_numbers<[2], [1], [1], [2], [0, 0, 0, 1, 1, 2], [0], [0]>} : vector<2x8x8xf32>, vector<2x8x8xf32>, vector<2x8x8xf32> -> vector<2x8x8xf32>
    "tpu.trace_stop"() : () -> ()
    %40 = vector.extract_strided_slice %18 {offsets = [0, 0, 8], sizes = [2, 8, 8], strides = [1, 1, 1]} : vector<2x8x32xf32> to vector<2x8x8xf32>
    %41 = vector.extract_strided_slice %20 {offsets = [0, 0, 8], sizes = [2, 8, 8], strides = [1, 1, 1]} : vector<2x8x32xf32> to vector<2x8x8xf32>
    %42 = vector.extract_strided_slice %22 {offsets = [0, 0, 8], sizes = [2, 8, 8], strides = [1, 1, 1]} : vector<2x8x32xf32> to vector<2x8x8xf32>
    "tpu.trace_start"() <{level = 10 : i32, message = "bqd,bkd->bqk"}> : () -> ()
    %cst_13 = arith.constant dense<0.000000e+00> : vector<2x8x8xf32>
    %43 = tpu.matmul %40, %41, %cst_13 {dimension_numbers = #tpu.dot_dimension_numbers<[2], [2], [1], [1], [0, 0, 0, 1, 1, 1], [0], [0]>} : vector<2x8x8xf32>, vector<2x8x8xf32>, vector<2x8x8xf32> -> vector<2x8x8xf32>
    "tpu.trace_stop"() : () -> ()
    %cst_14 = arith.constant 0.353553385 : f32
    %44 = vector.broadcast %cst_14 : f32 to vector<2x8x8xf32>
    %45 = arith.mulf %43, %44 : vector<2x8x8xf32>
    %cst_15 = arith.constant dense<0xFF800000> : vector<2x8xf32>
    %46 = vector.multi_reduction <maximumf>, %45, %cst_15 [2] : vector<2x8x8xf32> to vector<2x8xf32>
    %47 = vector.shape_cast %46 : vector<2x8xf32> to vector<2x8x1xf32>
    %48 = vector.broadcast %47 : vector<2x8x1xf32> to vector<2x8x8xf32>
    %49 = arith.subf %45, %48 : vector<2x8x8xf32>
    %50 = math.exp %49 : vector<2x8x8xf32>
    %cst_16 = arith.constant dense<0.000000e+00> : vector<2x8xf32>
    %51 = vector.multi_reduction <add>, %50, %cst_16 [2] : vector<2x8x8xf32> to vector<2x8xf32>
    %52 = vector.shape_cast %51 : vector<2x8xf32> to vector<2x8x1xf32>
    %53 = tpu.reciprocal %52 {approx = true} : vector<2x8x1xf32> -> vector<2x8x1xf32>
    %54 = vector.broadcast %53 : vector<2x8x1xf32> to vector<2x8x8xf32>
    %55 = arith.mulf %50, %54 : vector<2x8x8xf32>
    "tpu.trace_start"() <{level = 10 : i32, message = "bqk,bkd->bqd"}> : () -> ()
    %cst_17 = arith.constant dense<0.000000e+00> : vector<2x8x8xf32>
    %56 = tpu.matmul %55, %42, %cst_17 {dimension_numbers = #tpu.dot_dimension_numbers<[2], [1], [1], [2], [0, 0, 0, 1, 1, 2], [0], [0]>} : vector<2x8x8xf32>, vector<2x8x8xf32>, vector<2x8x8xf32> -> vector<2x8x8xf32>
    "tpu.trace_stop"() : () -> ()
    %57 = vector.extract_strided_slice %18 {offsets = [0, 0, 16], sizes = [2, 8, 8], strides = [1, 1, 1]} : vector<2x8x32xf32> to vector<2x8x8xf32>
    %58 = vector.extract_strided_slice %20 {offsets = [0, 0, 16], sizes = [2, 8, 8], strides = [1, 1, 1]} : vector<2x8x32xf32> to vector<2x8x8xf32>
    %59 = vector.extract_strided_slice %22 {offsets = [0, 0, 16], sizes = [2, 8, 8], strides = [1, 1, 1]} : vector<2x8x32xf32> to vector<2x8x8xf32>
    "tpu.trace_start"() <{level = 10 : i32, message = "bqd,bkd->bqk"}> : () -> ()
    %cst_18 = arith.constant dense<0.000000e+00> : vector<2x8x8xf32>
    %60 = tpu.matmul %57, %58, %cst_18 {dimension_numbers = #tpu.dot_dimension_numbers<[2], [2], [1], [1], [0, 0, 0, 1, 1, 1], [0], [0]>} : vector<2x8x8xf32>, vector<2x8x8xf32>, vector<2x8x8xf32> -> vector<2x8x8xf32>
    "tpu.trace_stop"() : () -> ()
    %cst_19 = arith.constant 0.353553385 : f32
    %61 = vector.broadcast %cst_19 : f32 to vector<2x8x8xf32>
    %62 = arith.mulf %60, %61 : vector<2x8x8xf32>
    %cst_20 = arith.constant dense<0xFF800000> : vector<2x8xf32>
    %63 = vector.multi_reduction <maximumf>, %62, %cst_20 [2] : vector<2x8x8xf32> to vector<2x8xf32>
    %64 = vector.shape_cast %63 : vector<2x8xf32> to vector<2x8x1xf32>
    %65 = vector.broadcast %64 : vector<2x8x1xf32> to vector<2x8x8xf32>
    %66 = arith.subf %62, %65 : vector<2x8x8xf32>
    %67 = math.exp %66 : vector<2x8x8xf32>
    %cst_21 = arith.constant dense<0.000000e+00> : vector<2x8xf32>
    %68 = vector.multi_reduction <add>, %67, %cst_21 [2] : vector<2x8x8xf32> to vector<2x8xf32>
    %69 = vector.shape_cast %68 : vector<2x8xf32> to vector<2x8x1xf32>
    %70 = tpu.reciprocal %69 {approx = true} : vector<2x8x1xf32> -> vector<2x8x1xf32>
    %71 = vector.broadcast %70 : vector<2x8x1xf32> to vector<2x8x8xf32>
    %72 = arith.mulf %67, %71 : vector<2x8x8xf32>
    "tpu.trace_start"() <{level = 10 : i32, message = "bqk,bkd->bqd"}> : () -> ()
    %cst_22 = arith.constant dense<0.000000e+00> : vector<2x8x8xf32>
    %73 = tpu.matmul %72, %59, %cst_22 {dimension_numbers = #tpu.dot_dimension_numbers<[2], [1], [1], [2], [0, 0, 0, 1, 1, 2], [0], [0]>} : vector<2x8x8xf32>, vector<2x8x8xf32>, vector<2x8x8xf32> -> vector<2x8x8xf32>
    "tpu.trace_stop"() : () -> ()
    %74 = vector.extract_strided_slice %18 {offsets = [0, 0, 24], sizes = [2, 8, 8], strides = [1, 1, 1]} : vector<2x8x32xf32> to vector<2x8x8xf32>
    %75 = vector.extract_strided_slice %20 {offsets = [0, 0, 24], sizes = [2, 8, 8], strides = [1, 1, 1]} : vector<2x8x32xf32> to vector<2x8x8xf32>
    %76 = vector.extract_strided_slice %22 {offsets = [0, 0, 24], sizes = [2, 8, 8], strides = [1, 1, 1]} : vector<2x8x32xf32> to vector<2x8x8xf32>
    "tpu.trace_start"() <{level = 10 : i32, message = "bqd,bkd->bqk"}> : () -> ()
    %cst_23 = arith.constant dense<0.000000e+00> : vector<2x8x8xf32>
    %77 = tpu.matmul %74, %75, %cst_23 {dimension_numbers = #tpu.dot_dimension_numbers<[2], [2], [1], [1], [0, 0, 0, 1, 1, 1], [0], [0]>} : vector<2x8x8xf32>, vector<2x8x8xf32>, vector<2x8x8xf32> -> vector<2x8x8xf32>
    "tpu.trace_stop"() : () -> ()
    %cst_24 = arith.constant 0.353553385 : f32
    %78 = vector.broadcast %cst_24 : f32 to vector<2x8x8xf32>
    %79 = arith.mulf %77, %78 : vector<2x8x8xf32>
    %cst_25 = arith.constant dense<0xFF800000> : vector<2x8xf32>
    %80 = vector.multi_reduction <maximumf>, %79, %cst_25 [2] : vector<2x8x8xf32> to vector<2x8xf32>
    %81 = vector.shape_cast %80 : vector<2x8xf32> to vector<2x8x1xf32>
    %82 = vector.broadcast %81 : vector<2x8x1xf32> to vector<2x8x8xf32>
    %83 = arith.subf %79, %82 : vector<2x8x8xf32>
    %84 = math.exp %83 : vector<2x8x8xf32>
    %cst_26 = arith.constant dense<0.000000e+00> : vector<2x8xf32>
    %85 = vector.multi_reduction <add>, %84, %cst_26 [2] : vector<2x8x8xf32> to vector<2x8xf32>
    %86 = vector.shape_cast %85 : vector<2x8xf32> to vector<2x8x1xf32>
    %87 = tpu.reciprocal %86 {approx = true} : vector<2x8x1xf32> -> vector<2x8x1xf32>
    %88 = vector.broadcast %87 : vector<2x8x1xf32> to vector<2x8x8xf32>
    %89 = arith.mulf %84, %88 : vector<2x8x8xf32>
    "tpu.trace_start"() <{level = 10 : i32, message = "bqk,bkd->bqd"}> : () -> ()
    %cst_27 = arith.constant dense<0.000000e+00> : vector<2x8x8xf32>
    %90 = tpu.matmul %89, %76, %cst_27 {dimension_numbers = #tpu.dot_dimension_numbers<[2], [1], [1], [2], [0, 0, 0, 1, 1, 2], [0], [0]>} : vector<2x8x8xf32>, vector<2x8x8xf32>, vector<2x8x8xf32> -> vector<2x8x8xf32>
    "tpu.trace_stop"() : () -> ()
    %91 = tpu.concatenate %39, %56, %73, %90 in 2 : vector<2x8x8xf32>, vector<2x8x8xf32>, vector<2x8x8xf32>, vector<2x8x8xf32> -> vector<2x8x32xf32>
    %92 = vector.shape_cast %91 : vector<2x8x32xf32> to vector<16x32xf32>
    %c0_28 = arith.constant 0 : index
    %c0_29 = arith.constant 0 : index
    %c0_30 = arith.constant 0 : index
    %93 = vector.load %arg2[%c0_28, %c0_29, %c0_30] : memref<2x32x32xf32, #tpu.memory_space<vmem>>, vector<1x32x32xf32>
    %94 = vector.shape_cast %93 : vector<1x32x32xf32> to vector<32x32xf32>
    %cst_31 = arith.constant dense<0.000000e+00> : vector<16x32xf32>
    %95 = tpu.matmul %92, %94, %cst_31 {dimension_numbers = #tpu.dot_dimension_numbers<[1], [0], [0], [1], [0, 0, 1, 1], [], []>} : vector<16x32xf32>, vector<32x32xf32>, vector<16x32xf32> -> vector<16x32xf32>
    %96 = vector.broadcast %5 : vector<1x32xf32> to vector<16x32xf32>
    %97 = arith.addf %95, %96 : vector<16x32xf32>
    %98 = arith.addf %1, %97 : vector<16x32xf32>
    %cst_32 = arith.constant dense<0.000000e+00> : vector<16xf32>
    %99 = vector.multi_reduction <add>, %98, %cst_32 [1] : vector<16x32xf32> to vector<16xf32>
    %100 = vector.shape_cast %99 : vector<16xf32> to vector<16x1xf32>
    %cst_33 = arith.constant 3.200000e+01 : f32
    %101 = vector.broadcast %cst_33 : f32 to vector<16x1xf32>
    %102 = arith.divf %100, %101 : vector<16x1xf32>
    %103 = vector.broadcast %102 : vector<16x1xf32> to vector<16x32xf32>
    %104 = arith.subf %98, %103 : vector<16x32xf32>
    %105 = arith.mulf %104, %104 : vector<16x32xf32>
    %cst_34 = arith.constant dense<0.000000e+00> : vector<16xf32>
    %106 = vector.multi_reduction <add>, %105, %cst_34 [1] : vector<16x32xf32> to vector<16xf32>
    %107 = vector.shape_cast %106 : vector<16xf32> to vector<16x1xf32>
    %cst_35 = arith.constant 3.200000e+01 : f32
    %108 = vector.broadcast %cst_35 : f32 to vector<16x1xf32>
    %109 = arith.divf %107, %108 : vector<16x1xf32>
    %cst_36 = arith.constant 9.99999974E-6 : f32
    %110 = vector.broadcast %cst_36 : f32 to vector<16x1xf32>
    %111 = arith.addf %109, %110 : vector<16x1xf32>
    %112 = math.rsqrt %111 : vector<16x1xf32>
    %113 = vector.broadcast %112 : vector<16x1xf32> to vector<16x32xf32>
    %114 = arith.mulf %104, %113 : vector<16x32xf32>
    %115 = vector.broadcast %8 : vector<1x32xf32> to vector<16x32xf32>
    %116 = arith.mulf %114, %115 : vector<16x32xf32>
    %117 = vector.broadcast %9 : vector<1x32xf32> to vector<16x32xf32>
    %118 = arith.addf %116, %117 : vector<16x32xf32>
    %c0_37 = arith.constant 0 : index
    %c0_38 = arith.constant 0 : index
    %c0_39 = arith.constant 0 : index
    %119 = vector.load %arg3[%c0_37, %c0_38, %c0_39] : memref<2x32x64xf32, #tpu.memory_space<vmem>>, vector<1x32x64xf32>
    %120 = vector.shape_cast %119 : vector<1x32x64xf32> to vector<32x64xf32>
    %cst_40 = arith.constant dense<0.000000e+00> : vector<16x64xf32>
    %121 = tpu.matmul %118, %120, %cst_40 {dimension_numbers = #tpu.dot_dimension_numbers<[1], [0], [0], [1], [0, 0, 1, 1], [], []>} : vector<16x32xf32>, vector<32x64xf32>, vector<16x64xf32> -> vector<16x64xf32>
    %122 = vector.broadcast %6 : vector<1x64xf32> to vector<16x64xf32>
    %123 = arith.addf %121, %122 : vector<16x64xf32>
    %cst_41 = arith.constant 0.000000e+00 : f32
    %124 = vector.broadcast %cst_41 : f32 to vector<16x64xf32>
    %125 = arith.maximumf %123, %124 : vector<16x64xf32>
    %c0_42 = arith.constant 0 : index
    %c0_43 = arith.constant 0 : index
    %c0_44 = arith.constant 0 : index
    %126 = vector.load %arg4[%c0_42, %c0_43, %c0_44] : memref<2x64x32xf32, #tpu.memory_space<vmem>>, vector<1x64x32xf32>
    %127 = vector.shape_cast %126 : vector<1x64x32xf32> to vector<64x32xf32>
    %cst_45 = arith.constant dense<0.000000e+00> : vector<16x32xf32>
    %128 = tpu.matmul %125, %127, %cst_45 {dimension_numbers = #tpu.dot_dimension_numbers<[1], [0], [0], [1], [0, 0, 1, 1], [], []>} : vector<16x64xf32>, vector<64x32xf32>, vector<16x32xf32> -> vector<16x32xf32>
    %129 = vector.broadcast %7 : vector<1x32xf32> to vector<16x32xf32>
    %130 = arith.addf %128, %129 : vector<16x32xf32>
    %131 = arith.addf %118, %130 : vector<16x32xf32>
    %cst_46 = arith.constant dense<0.000000e+00> : vector<16xf32>
    %132 = vector.multi_reduction <add>, %131, %cst_46 [1] : vector<16x32xf32> to vector<16xf32>
    %133 = vector.shape_cast %132 : vector<16xf32> to vector<16x1xf32>
    %cst_47 = arith.constant 3.200000e+01 : f32
    %134 = vector.broadcast %cst_47 : f32 to vector<16x1xf32>
    %135 = arith.divf %133, %134 : vector<16x1xf32>
    %136 = vector.broadcast %135 : vector<16x1xf32> to vector<16x32xf32>
    %137 = arith.subf %131, %136 : vector<16x32xf32>
    %138 = arith.mulf %137, %137 : vector<16x32xf32>
    %cst_48 = arith.constant dense<0.000000e+00> : vector<16xf32>
    %139 = vector.multi_reduction <add>, %138, %cst_48 [1] : vector<16x32xf32> to vector<16xf32>
    %140 = vector.shape_cast %139 : vector<16xf32> to vector<16x1xf32>
    %cst_49 = arith.constant 3.200000e+01 : f32
    %141 = vector.broadcast %cst_49 : f32 to vector<16x1xf32>
    %142 = arith.divf %140, %141 : vector<16x1xf32>
    %cst_50 = arith.constant 9.99999974E-6 : f32
    %143 = vector.broadcast %cst_50 : f32 to vector<16x1xf32>
    %144 = arith.addf %142, %143 : vector<16x1xf32>
    %145 = math.rsqrt %144 : vector<16x1xf32>
    %146 = vector.broadcast %145 : vector<16x1xf32> to vector<16x32xf32>
    %147 = arith.mulf %137, %146 : vector<16x32xf32>
    %148 = vector.broadcast %10 : vector<1x32xf32> to vector<16x32xf32>
    %149 = arith.mulf %147, %148 : vector<16x32xf32>
    %150 = vector.broadcast %11 : vector<1x32xf32> to vector<16x32xf32>
    %151 = arith.addf %149, %150 : vector<16x32xf32>
    %c1 = arith.constant 1 : index
    %c0_51 = arith.constant 0 : index
    %c0_52 = arith.constant 0 : index
    %152 = vector.load %arg5[%c1, %c0_51, %c0_52] : memref<2x8x128xf32, #tpu.memory_space<vmem>>, vector<1x8x128xf32>
    %153 = vector.shape_cast %152 : vector<1x8x128xf32> to vector<8x128xf32>
    %154 = vector.extract_strided_slice %153 {offsets = [0, 0], sizes = [1, 96], strides = [1, 1]} : vector<8x128xf32> to vector<1x96xf32>
    %155 = vector.extract_strided_slice %153 {offsets = [1, 0], sizes = [1, 32], strides = [1, 1]} : vector<8x128xf32> to vector<1x32xf32>
    %156 = vector.extract_strided_slice %153 {offsets = [2, 0], sizes = [1, 64], strides = [1, 1]} : vector<8x128xf32> to vector<1x64xf32>
    %157 = vector.extract_strided_slice %153 {offsets = [3, 0], sizes = [1, 32], strides = [1, 1]} : vector<8x128xf32> to vector<1x32xf32>
    %158 = vector.extract_strided_slice %153 {offsets = [4, 0], sizes = [1, 32], strides = [1, 1]} : vector<8x128xf32> to vector<1x32xf32>
    %159 = vector.extract_strided_slice %153 {offsets = [5, 0], sizes = [1, 32], strides = [1, 1]} : vector<8x128xf32> to vector<1x32xf32>
    %160 = vector.extract_strided_slice %153 {offsets = [6, 0], sizes = [1, 32], strides = [1, 1]} : vector<8x128xf32> to vector<1x32xf32>
    %161 = vector.extract_strided_slice %153 {offsets = [7, 0], sizes = [1, 32], strides = [1, 1]} : vector<8x128xf32> to vector<1x32xf32>
    %c1_53 = arith.constant 1 : index
    %c0_54 = arith.constant 0 : index
    %c0_55 = arith.constant 0 : index
    %162 = vector.load %arg1[%c1_53, %c0_54, %c0_55] : memref<2x32x96xf32, #tpu.memory_space<vmem>>, vector<1x32x96xf32>
    %163 = vector.shape_cast %162 : vector<1x32x96xf32> to vector<32x96xf32>
    %cst_56 = arith.constant dense<0.000000e+00> : vector<16x96xf32>
    %164 = tpu.matmul %151, %163, %cst_56 {dimension_numbers = #tpu.dot_dimension_numbers<[1], [0], [0], [1], [0, 0, 1, 1], [], []>} : vector<16x32xf32>, vector<32x96xf32>, vector<16x96xf32> -> vector<16x96xf32>
    %165 = vector.broadcast %154 : vector<1x96xf32> to vector<16x96xf32>
    %166 = arith.addf %164, %165 : vector<16x96xf32>
    %167 = vector.extract_strided_slice %166 {offsets = [0, 0], sizes = [16, 32], strides = [1, 1]} : vector<16x96xf32> to vector<16x32xf32>
    %168 = vector.shape_cast %167 : vector<16x32xf32> to vector<2x8x32xf32>
    %169 = vector.extract_strided_slice %166 {offsets = [0, 32], sizes = [16, 32], strides = [1, 1]} : vector<16x96xf32> to vector<16x32xf32>
    %170 = vector.shape_cast %169 : vector<16x32xf32> to vector<2x8x32xf32>
    %171 = vector.extract_strided_slice %166 {offsets = [0, 64], sizes = [16, 32], strides = [1, 1]} : vector<16x96xf32> to vector<16x32xf32>
    %172 = vector.shape_cast %171 : vector<16x32xf32> to vector<2x8x32xf32>
    %173 = vector.extract_strided_slice %168 {offsets = [0, 0, 0], sizes = [2, 8, 8], strides = [1, 1, 1]} : vector<2x8x32xf32> to vector<2x8x8xf32>
    %174 = vector.extract_strided_slice %170 {offsets = [0, 0, 0], sizes = [2, 8, 8], strides = [1, 1, 1]} : vector<2x8x32xf32> to vector<2x8x8xf32>
    %175 = vector.extract_strided_slice %172 {offsets = [0, 0, 0], sizes = [2, 8, 8], strides = [1, 1, 1]} : vector<2x8x32xf32> to vector<2x8x8xf32>
    "tpu.trace_start"() <{level = 10 : i32, message = "bqd,bkd->bqk"}> : () -> ()
    %cst_57 = arith.constant dense<0.000000e+00> : vector<2x8x8xf32>
    %176 = tpu.matmul %173, %174, %cst_57 {dimension_numbers = #tpu.dot_dimension_numbers<[2], [2], [1], [1], [0, 0, 0, 1, 1, 1], [0], [0]>} : vector<2x8x8xf32>, vector<2x8x8xf32>, vector<2x8x8xf32> -> vector<2x8x8xf32>
    "tpu.trace_stop"() : () -> ()
    %cst_58 = arith.constant 0.353553385 : f32
    %177 = vector.broadcast %cst_58 : f32 to vector<2x8x8xf32>
    %178 = arith.mulf %176, %177 : vector<2x8x8xf32>
    %cst_59 = arith.constant dense<0xFF800000> : vector<2x8xf32>
    %179 = vector.multi_reduction <maximumf>, %178, %cst_59 [2] : vector<2x8x8xf32> to vector<2x8xf32>
    %180 = vector.shape_cast %179 : vector<2x8xf32> to vector<2x8x1xf32>
    %181 = vector.broadcast %180 : vector<2x8x1xf32> to vector<2x8x8xf32>
    %182 = arith.subf %178, %181 : vector<2x8x8xf32>
    %183 = math.exp %182 : vector<2x8x8xf32>
    %cst_60 = arith.constant dense<0.000000e+00> : vector<2x8xf32>
    %184 = vector.multi_reduction <add>, %183, %cst_60 [2] : vector<2x8x8xf32> to vector<2x8xf32>
    %185 = vector.shape_cast %184 : vector<2x8xf32> to vector<2x8x1xf32>
    %186 = tpu.reciprocal %185 {approx = true} : vector<2x8x1xf32> -> vector<2x8x1xf32>
    %187 = vector.broadcast %186 : vector<2x8x1xf32> to vector<2x8x8xf32>
    %188 = arith.mulf %183, %187 : vector<2x8x8xf32>
    "tpu.trace_start"() <{level = 10 : i32, message = "bqk,bkd->bqd"}> : () -> ()
    %cst_61 = arith.constant dense<0.000000e+00> : vector<2x8x8xf32>
    %189 = tpu.matmul %188, %175, %cst_61 {dimension_numbers = #tpu.dot_dimension_numbers<[2], [1], [1], [2], [0, 0, 0, 1, 1, 2], [0], [0]>} : vector<2x8x8xf32>, vector<2x8x8xf32>, vector<2x8x8xf32> -> vector<2x8x8xf32>
    "tpu.trace_stop"() : () -> ()
    %190 = vector.extract_strided_slice %168 {offsets = [0, 0, 8], sizes = [2, 8, 8], strides = [1, 1, 1]} : vector<2x8x32xf32> to vector<2x8x8xf32>
    %191 = vector.extract_strided_slice %170 {offsets = [0, 0, 8], sizes = [2, 8, 8], strides = [1, 1, 1]} : vector<2x8x32xf32> to vector<2x8x8xf32>
    %192 = vector.extract_strided_slice %172 {offsets = [0, 0, 8], sizes = [2, 8, 8], strides = [1, 1, 1]} : vector<2x8x32xf32> to vector<2x8x8xf32>
    "tpu.trace_start"() <{level = 10 : i32, message = "bqd,bkd->bqk"}> : () -> ()
    %cst_62 = arith.constant dense<0.000000e+00> : vector<2x8x8xf32>
    %193 = tpu.matmul %190, %191, %cst_62 {dimension_numbers = #tpu.dot_dimension_numbers<[2], [2], [1], [1], [0, 0, 0, 1, 1, 1], [0], [0]>} : vector<2x8x8xf32>, vector<2x8x8xf32>, vector<2x8x8xf32> -> vector<2x8x8xf32>
    "tpu.trace_stop"() : () -> ()
    %cst_63 = arith.constant 0.353553385 : f32
    %194 = vector.broadcast %cst_63 : f32 to vector<2x8x8xf32>
    %195 = arith.mulf %193, %194 : vector<2x8x8xf32>
    %cst_64 = arith.constant dense<0xFF800000> : vector<2x8xf32>
    %196 = vector.multi_reduction <maximumf>, %195, %cst_64 [2] : vector<2x8x8xf32> to vector<2x8xf32>
    %197 = vector.shape_cast %196 : vector<2x8xf32> to vector<2x8x1xf32>
    %198 = vector.broadcast %197 : vector<2x8x1xf32> to vector<2x8x8xf32>
    %199 = arith.subf %195, %198 : vector<2x8x8xf32>
    %200 = math.exp %199 : vector<2x8x8xf32>
    %cst_65 = arith.constant dense<0.000000e+00> : vector<2x8xf32>
    %201 = vector.multi_reduction <add>, %200, %cst_65 [2] : vector<2x8x8xf32> to vector<2x8xf32>
    %202 = vector.shape_cast %201 : vector<2x8xf32> to vector<2x8x1xf32>
    %203 = tpu.reciprocal %202 {approx = true} : vector<2x8x1xf32> -> vector<2x8x1xf32>
    %204 = vector.broadcast %203 : vector<2x8x1xf32> to vector<2x8x8xf32>
    %205 = arith.mulf %200, %204 : vector<2x8x8xf32>
    "tpu.trace_start"() <{level = 10 : i32, message = "bqk,bkd->bqd"}> : () -> ()
    %cst_66 = arith.constant dense<0.000000e+00> : vector<2x8x8xf32>
    %206 = tpu.matmul %205, %192, %cst_66 {dimension_numbers = #tpu.dot_dimension_numbers<[2], [1], [1], [2], [0, 0, 0, 1, 1, 2], [0], [0]>} : vector<2x8x8xf32>, vector<2x8x8xf32>, vector<2x8x8xf32> -> vector<2x8x8xf32>
    "tpu.trace_stop"() : () -> ()
    %207 = vector.extract_strided_slice %168 {offsets = [0, 0, 16], sizes = [2, 8, 8], strides = [1, 1, 1]} : vector<2x8x32xf32> to vector<2x8x8xf32>
    %208 = vector.extract_strided_slice %170 {offsets = [0, 0, 16], sizes = [2, 8, 8], strides = [1, 1, 1]} : vector<2x8x32xf32> to vector<2x8x8xf32>
    %209 = vector.extract_strided_slice %172 {offsets = [0, 0, 16], sizes = [2, 8, 8], strides = [1, 1, 1]} : vector<2x8x32xf32> to vector<2x8x8xf32>
    "tpu.trace_start"() <{level = 10 : i32, message = "bqd,bkd->bqk"}> : () -> ()
    %cst_67 = arith.constant dense<0.000000e+00> : vector<2x8x8xf32>
    %210 = tpu.matmul %207, %208, %cst_67 {dimension_numbers = #tpu.dot_dimension_numbers<[2], [2], [1], [1], [0, 0, 0, 1, 1, 1], [0], [0]>} : vector<2x8x8xf32>, vector<2x8x8xf32>, vector<2x8x8xf32> -> vector<2x8x8xf32>
    "tpu.trace_stop"() : () -> ()
    %cst_68 = arith.constant 0.353553385 : f32
    %211 = vector.broadcast %cst_68 : f32 to vector<2x8x8xf32>
    %212 = arith.mulf %210, %211 : vector<2x8x8xf32>
    %cst_69 = arith.constant dense<0xFF800000> : vector<2x8xf32>
    %213 = vector.multi_reduction <maximumf>, %212, %cst_69 [2] : vector<2x8x8xf32> to vector<2x8xf32>
    %214 = vector.shape_cast %213 : vector<2x8xf32> to vector<2x8x1xf32>
    %215 = vector.broadcast %214 : vector<2x8x1xf32> to vector<2x8x8xf32>
    %216 = arith.subf %212, %215 : vector<2x8x8xf32>
    %217 = math.exp %216 : vector<2x8x8xf32>
    %cst_70 = arith.constant dense<0.000000e+00> : vector<2x8xf32>
    %218 = vector.multi_reduction <add>, %217, %cst_70 [2] : vector<2x8x8xf32> to vector<2x8xf32>
    %219 = vector.shape_cast %218 : vector<2x8xf32> to vector<2x8x1xf32>
    %220 = tpu.reciprocal %219 {approx = true} : vector<2x8x1xf32> -> vector<2x8x1xf32>
    %221 = vector.broadcast %220 : vector<2x8x1xf32> to vector<2x8x8xf32>
    %222 = arith.mulf %217, %221 : vector<2x8x8xf32>
    "tpu.trace_start"() <{level = 10 : i32, message = "bqk,bkd->bqd"}> : () -> ()
    %cst_71 = arith.constant dense<0.000000e+00> : vector<2x8x8xf32>
    %223 = tpu.matmul %222, %209, %cst_71 {dimension_numbers = #tpu.dot_dimension_numbers<[2], [1], [1], [2], [0, 0, 0, 1, 1, 2], [0], [0]>} : vector<2x8x8xf32>, vector<2x8x8xf32>, vector<2x8x8xf32> -> vector<2x8x8xf32>
    "tpu.trace_stop"() : () -> ()
    %224 = vector.extract_strided_slice %168 {offsets = [0, 0, 24], sizes = [2, 8, 8], strides = [1, 1, 1]} : vector<2x8x32xf32> to vector<2x8x8xf32>
    %225 = vector.extract_strided_slice %170 {offsets = [0, 0, 24], sizes = [2, 8, 8], strides = [1, 1, 1]} : vector<2x8x32xf32> to vector<2x8x8xf32>
    %226 = vector.extract_strided_slice %172 {offsets = [0, 0, 24], sizes = [2, 8, 8], strides = [1, 1, 1]} : vector<2x8x32xf32> to vector<2x8x8xf32>
    "tpu.trace_start"() <{level = 10 : i32, message = "bqd,bkd->bqk"}> : () -> ()
    %cst_72 = arith.constant dense<0.000000e+00> : vector<2x8x8xf32>
    %227 = tpu.matmul %224, %225, %cst_72 {dimension_numbers = #tpu.dot_dimension_numbers<[2], [2], [1], [1], [0, 0, 0, 1, 1, 1], [0], [0]>} : vector<2x8x8xf32>, vector<2x8x8xf32>, vector<2x8x8xf32> -> vector<2x8x8xf32>
    "tpu.trace_stop"() : () -> ()
    %cst_73 = arith.constant 0.353553385 : f32
    %228 = vector.broadcast %cst_73 : f32 to vector<2x8x8xf32>
    %229 = arith.mulf %227, %228 : vector<2x8x8xf32>
    %cst_74 = arith.constant dense<0xFF800000> : vector<2x8xf32>
    %230 = vector.multi_reduction <maximumf>, %229, %cst_74 [2] : vector<2x8x8xf32> to vector<2x8xf32>
    %231 = vector.shape_cast %230 : vector<2x8xf32> to vector<2x8x1xf32>
    %232 = vector.broadcast %231 : vector<2x8x1xf32> to vector<2x8x8xf32>
    %233 = arith.subf %229, %232 : vector<2x8x8xf32>
    %234 = math.exp %233 : vector<2x8x8xf32>
    %cst_75 = arith.constant dense<0.000000e+00> : vector<2x8xf32>
    %235 = vector.multi_reduction <add>, %234, %cst_75 [2] : vector<2x8x8xf32> to vector<2x8xf32>
    %236 = vector.shape_cast %235 : vector<2x8xf32> to vector<2x8x1xf32>
    %237 = tpu.reciprocal %236 {approx = true} : vector<2x8x1xf32> -> vector<2x8x1xf32>
    %238 = vector.broadcast %237 : vector<2x8x1xf32> to vector<2x8x8xf32>
    %239 = arith.mulf %234, %238 : vector<2x8x8xf32>
    "tpu.trace_start"() <{level = 10 : i32, message = "bqk,bkd->bqd"}> : () -> ()
    %cst_76 = arith.constant dense<0.000000e+00> : vector<2x8x8xf32>
    %240 = tpu.matmul %239, %226, %cst_76 {dimension_numbers = #tpu.dot_dimension_numbers<[2], [1], [1], [2], [0, 0, 0, 1, 1, 2], [0], [0]>} : vector<2x8x8xf32>, vector<2x8x8xf32>, vector<2x8x8xf32> -> vector<2x8x8xf32>
    "tpu.trace_stop"() : () -> ()
    %241 = tpu.concatenate %189, %206, %223, %240 in 2 : vector<2x8x8xf32>, vector<2x8x8xf32>, vector<2x8x8xf32>, vector<2x8x8xf32> -> vector<2x8x32xf32>
    %242 = vector.shape_cast %241 : vector<2x8x32xf32> to vector<16x32xf32>
    %c1_77 = arith.constant 1 : index
    %c0_78 = arith.constant 0 : index
    %c0_79 = arith.constant 0 : index
    %243 = vector.load %arg2[%c1_77, %c0_78, %c0_79] : memref<2x32x32xf32, #tpu.memory_space<vmem>>, vector<1x32x32xf32>
    %244 = vector.shape_cast %243 : vector<1x32x32xf32> to vector<32x32xf32>
    %cst_80 = arith.constant dense<0.000000e+00> : vector<16x32xf32>
    %245 = tpu.matmul %242, %244, %cst_80 {dimension_numbers = #tpu.dot_dimension_numbers<[1], [0], [0], [1], [0, 0, 1, 1], [], []>} : vector<16x32xf32>, vector<32x32xf32>, vector<16x32xf32> -> vector<16x32xf32>
    %246 = vector.broadcast %155 : vector<1x32xf32> to vector<16x32xf32>
    %247 = arith.addf %245, %246 : vector<16x32xf32>
    %248 = arith.addf %151, %247 : vector<16x32xf32>
    %cst_81 = arith.constant dense<0.000000e+00> : vector<16xf32>
    %249 = vector.multi_reduction <add>, %248, %cst_81 [1] : vector<16x32xf32> to vector<16xf32>
    %250 = vector.shape_cast %249 : vector<16xf32> to vector<16x1xf32>
    %cst_82 = arith.constant 3.200000e+01 : f32
    %251 = vector.broadcast %cst_82 : f32 to vector<16x1xf32>
    %252 = arith.divf %250, %251 : vector<16x1xf32>
    %253 = vector.broadcast %252 : vector<16x1xf32> to vector<16x32xf32>
    %254 = arith.subf %248, %253 : vector<16x32xf32>
    %255 = arith.mulf %254, %254 : vector<16x32xf32>
    %cst_83 = arith.constant dense<0.000000e+00> : vector<16xf32>
    %256 = vector.multi_reduction <add>, %255, %cst_83 [1] : vector<16x32xf32> to vector<16xf32>
    %257 = vector.shape_cast %256 : vector<16xf32> to vector<16x1xf32>
    %cst_84 = arith.constant 3.200000e+01 : f32
    %258 = vector.broadcast %cst_84 : f32 to vector<16x1xf32>
    %259 = arith.divf %257, %258 : vector<16x1xf32>
    %cst_85 = arith.constant 9.99999974E-6 : f32
    %260 = vector.broadcast %cst_85 : f32 to vector<16x1xf32>
    %261 = arith.addf %259, %260 : vector<16x1xf32>
    %262 = math.rsqrt %261 : vector<16x1xf32>
    %263 = vector.broadcast %262 : vector<16x1xf32> to vector<16x32xf32>
    %264 = arith.mulf %254, %263 : vector<16x32xf32>
    %265 = vector.broadcast %158 : vector<1x32xf32> to vector<16x32xf32>
    %266 = arith.mulf %264, %265 : vector<16x32xf32>
    %267 = vector.broadcast %159 : vector<1x32xf32> to vector<16x32xf32>
    %268 = arith.addf %266, %267 : vector<16x32xf32>
    %c1_86 = arith.constant 1 : index
    %c0_87 = arith.constant 0 : index
    %c0_88 = arith.constant 0 : index
    %269 = vector.load %arg3[%c1_86, %c0_87, %c0_88] : memref<2x32x64xf32, #tpu.memory_space<vmem>>, vector<1x32x64xf32>
    %270 = vector.shape_cast %269 : vector<1x32x64xf32> to vector<32x64xf32>
    %cst_89 = arith.constant dense<0.000000e+00> : vector<16x64xf32>
    %271 = tpu.matmul %268, %270, %cst_89 {dimension_numbers = #tpu.dot_dimension_numbers<[1], [0], [0], [1], [0, 0, 1, 1], [], []>} : vector<16x32xf32>, vector<32x64xf32>, vector<16x64xf32> -> vector<16x64xf32>
    %272 = vector.broadcast %156 : vector<1x64xf32> to vector<16x64xf32>
    %273 = arith.addf %271, %272 : vector<16x64xf32>
    %cst_90 = arith.constant 0.000000e+00 : f32
    %274 = vector.broadcast %cst_90 : f32 to vector<16x64xf32>
    %275 = arith.maximumf %273, %274 : vector<16x64xf32>
    %c1_91 = arith.constant 1 : index
    %c0_92 = arith.constant 0 : index
    %c0_93 = arith.constant 0 : index
    %276 = vector.load %arg4[%c1_91, %c0_92, %c0_93] : memref<2x64x32xf32, #tpu.memory_space<vmem>>, vector<1x64x32xf32>
    %277 = vector.shape_cast %276 : vector<1x64x32xf32> to vector<64x32xf32>
    %cst_94 = arith.constant dense<0.000000e+00> : vector<16x32xf32>
    %278 = tpu.matmul %275, %277, %cst_94 {dimension_numbers = #tpu.dot_dimension_numbers<[1], [0], [0], [1], [0, 0, 1, 1], [], []>} : vector<16x64xf32>, vector<64x32xf32>, vector<16x32xf32> -> vector<16x32xf32>
    %279 = vector.broadcast %157 : vector<1x32xf32> to vector<16x32xf32>
    %280 = arith.addf %278, %279 : vector<16x32xf32>
    %281 = arith.addf %268, %280 : vector<16x32xf32>
    %cst_95 = arith.constant dense<0.000000e+00> : vector<16xf32>
    %282 = vector.multi_reduction <add>, %281, %cst_95 [1] : vector<16x32xf32> to vector<16xf32>
    %283 = vector.shape_cast %282 : vector<16xf32> to vector<16x1xf32>
    %cst_96 = arith.constant 3.200000e+01 : f32
    %284 = vector.broadcast %cst_96 : f32 to vector<16x1xf32>
    %285 = arith.divf %283, %284 : vector<16x1xf32>
    %286 = vector.broadcast %285 : vector<16x1xf32> to vector<16x32xf32>
    %287 = arith.subf %281, %286 : vector<16x32xf32>
    %288 = arith.mulf %287, %287 : vector<16x32xf32>
    %cst_97 = arith.constant dense<0.000000e+00> : vector<16xf32>
    %289 = vector.multi_reduction <add>, %288, %cst_97 [1] : vector<16x32xf32> to vector<16xf32>
    %290 = vector.shape_cast %289 : vector<16xf32> to vector<16x1xf32>
    %cst_98 = arith.constant 3.200000e+01 : f32
    %291 = vector.broadcast %cst_98 : f32 to vector<16x1xf32>
    %292 = arith.divf %290, %291 : vector<16x1xf32>
    %cst_99 = arith.constant 9.99999974E-6 : f32
    %293 = vector.broadcast %cst_99 : f32 to vector<16x1xf32>
    %294 = arith.addf %292, %293 : vector<16x1xf32>
    %295 = math.rsqrt %294 : vector<16x1xf32>
    %296 = vector.broadcast %295 : vector<16x1xf32> to vector<16x32xf32>
    %297 = arith.mulf %287, %296 : vector<16x32xf32>
    %298 = vector.broadcast %160 : vector<1x32xf32> to vector<16x32xf32>
    %299 = arith.mulf %297, %298 : vector<16x32xf32>
    %300 = vector.broadcast %161 : vector<1x32xf32> to vector<16x32xf32>
    %301 = arith.addf %299, %300 : vector<16x32xf32>
    %302 = vector.shape_cast %301 : vector<16x32xf32> to vector<2x8x32xf32>
    %c0_100 = arith.constant 0 : index
    %c0_101 = arith.constant 0 : index
    %c0_102 = arith.constant 0 : index
    %303 = vector.load %arg6[%c0_100, %c0_101, %c0_102] : memref<2x8x32xf32, #tpu.memory_space<vmem>>, vector<2x8x32xf32>
    tpu.vector_store %arg6[%c0_100, %c0_101, %c0_102], %302 {strides = array<i32>} : memref<2x8x32xf32, #tpu.memory_space<vmem>>, vector<2x8x32xf32>,
    return
  }
}

</mosaic_0001>

<bundles_post_ra>
// kernel: tpu_custom_call.1
= control target key start
LH: loop header
LB: loop body
LE: loop exit
PB: predicated region body
PF: predicated region fallthrough
CT: control target
= control target key end

     0   :  { %11 = vsyncpa [#allocation3], 0  ;;  %s2494_s0 = inlined_call_operand.hbm [shape: f32[2,8,32], index: 0, kind: input, shape index: {}]   ;;  %s2495_s1 = inlined_call_operand.vmem [shape: f32[2,32,96], index: 1, kind: input, shape index: {}]   ;;  %s2496_s2 = inlined_call_operand.vmem [shape: f32[2,32,32], index: 2, kind: input, shape index: {}]   ;;  %s2497_s3 = inlined_call_operand.vmem [shape: f32[2,32,64], index: 3, kind: input, shape index: {}]   ;;  %s2498_s4 = inlined_call_operand.vmem [shape: f32[2,64,32], index: 4, kind: input, shape index: {}]   ;;  %s2499_s5 = inlined_call_operand.hbm [shape: f32[2,8,128], index: 5, kind: input, shape index: {}]   ;;  %s2500_s6 = inlined_call_operand.hbm [shape: f32[2,8,32], index: 6, kind: output, shape index: {}]  }
   0x1   :  { %12 = vsyncpa [#allocation6], 0 }
   0x2   :  { %13 = vsyncpa [#allocation4], 0  ;;  %s18_s23 = sshll.u32 %s2494_s0, 4  ;;  %s1996_s24 = smov [#allocation2]   ;;  %s19_s23 = int_to_ptr.hbm [resolvable:$true] %s18_s23 }
   0x3   :  { %s20_s25 = sshll.u32 %s1996_s24, 4  ;;  %s39_s28 = sshll.u32 %s2499_s5, 4  ;;  %s21_s25 = int_to_ptr.vmem [resolvable:$true] %s20_s25  ;;  %s40_s28 = int_to_ptr.hbm [resolvable:$true] %s39_s28 }
   0x4   :  { %s1997_s29 = smov 128   ;;  %s1998_s30 = smov 8  }
   0x5   :  { %26 = dma.hbm_to_vmem [thread:$0]  %s19_s23, 256, %s21_s25, [#allocation3], %s1997_s29, %s1997_s29, %s1998_s30  }
   0x6   :  { %s1999_s7 = smov [#allocation5]  }
   0x7   :  { %s41_s8 = sshll.u32 %s1999_s7, 4  ;;  %s42_s8 = int_to_ptr.vmem [resolvable:$true] %s41_s8 }
   0x8   :  { %47 = dma.hbm_to_vmem [thread:$0]  %s40_s28, 256, %s42_s8, [#allocation6], %s1997_s29, %s1997_s29, %s1998_s30  }
   0x9   :  { %1990 = dma.done.wait [#allocation3], 256  }
   0xa   :  { %1991 = vsyncadd [#allocation3], 4294967040 }
   0xb   :  { %1992 = dma.done.wait [#allocation6], 256  }
   0xc   :  { %1993 = vsyncadd [#allocation6], 4294967040  ;;  %v62_v0 = vld [vmem:[%s2495_s1 + $0x18] sm:$0xff]  ;;  %v61_v1 = vld [vmem:[%s2495_s1 + $0x10] sm:$0xff]  ;;  %vm64_vm0 = vcmask 261120   ;;  %s2000_s15 = smov 88  }
   0xd   :  { %83 = vmatpush.msra.mxu0 %v62_v0  ;;  %v60_v2 = vld [vmem:[%s2495_s1 + $0x8] sm:$0xff]  ;;  %v59_v3 = vld [vmem:[%s2495_s1] sm:$0xff]  ;;  %v2082_v6 = vld [vmem:[#allocation5] sm:$0xff]  ;;  %s2001_s16 = smov 96   ;;  %s2002_s17 = smov 80   ;;  %vm97_vm1 = vcmask 64512  }
   0xe   :  { %v2074_v4 = vld [vmem:[#allocation2] sm:$0xff]  ;;  %v2078_v5 = vld [vmem:[#allocation2 + $0x8] sm:$0xff]  ;;  %v63_v7 = vperm.slane %v2082_v6, 0  ;;  %s2003_s18 = smov 120   ;;  %s2004_s19 = smov 72   ;;  %vm647_vm2 = vcmask 130048  }
   0xf   :  { %84 = vmatpush.msra.mxu0 %v61_v1  ;;  %s2005_s20 = smov 112   ;;  %s2006_s21 = smov 104   ;;  %vm650_vm3 = vcmask 195584   ;;  %vm791_vm11 = vcmask 523264  }
  0x10   :  { %s2007_s22 = smov 56   ;;  %s2008_s23 = smov 64  }
  0x11   :  { %85 = vmatpush.msra.mxu0 %v60_v2  ;;  %s2009_s24 = smov 48   ;;  %s2010_s25 = smov 40  }
  0x12   :  { %s2011_s26 = smov 16   ;;  %s2012_s27 = smov 24  }
  0x13   :  { %86 = vmatpush.msra.mxu0 %v59_v3 }
  0x14   :  { %1703 = vmatmul.msk.f32.vlgmr.msra.gmra.mxu0 %vm64_vm0, %v2074_v4 }
  0x1c   :  { %1704 = vmatmul.msk.f32.gmra.mxu0 %vm64_vm0, %v2078_v5 }
  0x91   :  { %v88_v8 = vpop.f32.mrf.mxu0 }
  0x92   :  { %v2085_v9 = vadd.f32 %v88_v8, %v63_v7 }
  0x94   :  { %227 = vrot.lane.b32.xlu2 %v2085_v9, %s2000_s15  ;;  %95 = vrot.lane.b32.xlu0 %v2085_v9, %s2001_s16 }
  0x99   :  { %v91_v10 = vpop.f32.mrf.mxu0 }
  0x9a   :  { %v2091_v11 = vadd.f32 %v91_v10, %v63_v7 }
  0x9c   :  { %255 = vrot.lane.b32.xlu1 %v2091_v11, %s2000_s15  ;;  %359 = vrot.lane.b32.xlu2 %v2085_v9, %s2002_s17  ;;  %v1811_v50 = vpack.i.bf16 %v2091_v11, %v2085_v9 }
  0x9d   :  { %123 = vrot.lane.b32.xlu0 %v2091_v11, %s2001_s16 }
  0xa4   :  { %253 = vrot.lane.b32.xlu1 %v2091_v11, %s2003_s18  ;;  %491 = vrot.lane.b32.xlu2 %v2085_v9, %s2004_s19 }
  0xa5   :  { %225 = vrot.lane.b32.xlu0 %v2085_v9, %s2003_s18 }
  0xac   :  { %357 = vrot.lane.b32.xlu1 %v2085_v9, %s2005_s20  ;;  %385 = vrot.lane.b32.xlu2 %v2091_v11, %s2005_s20 }
  0xad   :  { %489 = vrot.lane.b32.xlu0 %v2085_v9, %s2006_s21 }
  0xb4   :  { %387 = vrot.lane.b32.xlu1 %v2091_v11, %s2002_s17 }
  0xb5   :  { %519 = vrot.lane.b32.xlu0 %v2091_v11, %s2004_s19 }
  0xbc   :  { %517 = vrot.lane.b32.xlu1 %v2091_v11, %s2006_s21 }
  0xee   :  { %v228_v12 = vpop.permute.xlu2 %227 }
  0xef   :  { %1711 = vmatpush.xpose.msk.msra.mxu1 %vm97_vm1, %v228_v12 }
  0xf6   :  { %v360_v16 = vpop.permute.xlu2 %359 }
  0xfe   :  { %v492_v19 = vpop.permute.xlu2 %491 }
 0x106   :  { %v96_v13 = vpop.permute.xlu0 %95  ;;  %v386_v24 = vpop.permute.xlu2 %385 }
 0x107   :  { %1705 = vmatpush.xpose.msk.msra.mxu2 %vm97_vm1, %v96_v13 }
 0x10a   :  { %1706 = vmatmul.msk.f32.vlgmr.msra.gmra.mxu2 %vm97_vm1, %v2085_v9 }
 0x10e   :  { %v256_v14 = vpop.permute.xlu1 %255 }
 0x10f   :  { %v124_v15 = vpop.permute.xlu0 %123 }
 0x110   :  { %1707 = vmatpush.xpose.msk.msrb.mxu2 %vm97_vm1, %v124_v15 }
 0x113   :  { %1708 = vmatmul.msk.f32.vlgmr.msrb.gmra.mxu2 %vm97_vm1, %v2091_v11 }
 0x114   :  { %1713 = vmatpush.xpose.msk.msra.mxu2 %vm97_vm1, %v256_v14 }
 0x116   :  { %v254_v17 = vpop.permute.xlu1 %253 }
 0x117   :  { %v226_v18 = vpop.permute.xlu0 %225 }
 0x118   :  { %1717 = vmatpush.xpose.msk.msrb.mxu2 %vm97_vm1, %v360_v16  ;;  %1712 = vmatmul.msk.f32.vlgmr.msra.gmra.mxu1 %vm97_vm1, %v226_v18 }
 0x11b   :  { %1714 = vmatmul.msk.f32.vlgmr.msra.gmra.mxu2 %vm97_vm1, %v254_v17 }
 0x11c   :  { %1723 = vmatpush.xpose.msk.msra.mxu2 %vm97_vm1, %v492_v19 }
 0x11e   :  { %v358_v20 = vpop.permute.xlu1 %357 }
 0x11f   :  { %v490_v21 = vpop.permute.xlu0 %489 }
 0x123   :  { %1718 = vmatmul.msk.f32.vlgmr.msrb.gmra.mxu2 %vm97_vm1, %v358_v20 }
 0x126   :  { %v388_v22 = vpop.permute.xlu1 %387 }
 0x127   :  { %v520_v23 = vpop.permute.xlu0 %519  ;;  %1719 = vmatpush.xpose.msk.msrb.mxu0 %vm97_vm1, %v388_v22 }
 0x12a   :  { %1720 = vmatmul.msk.f32.vlgmr.msrb.gmra.mxu0 %vm97_vm1, %v386_v24 }
 0x12b   :  { %1725 = vmatpush.xpose.msk.msra.mxu0 %vm97_vm1, %v520_v23  ;;  %1724 = vmatmul.msk.f32.vlgmr.msra.gmra.mxu2 %vm97_vm1, %v490_v21 }
 0x12e   :  { %v518_v25 = vpop.permute.xlu1 %517 }
 0x132   :  { %1726 = vmatmul.msk.f32.vlgmr.msra.gmra.mxu0 %vm97_vm1, %v518_v25 }
 0x18d   :  { %v119_v26 = vpop.f32.mrf.mxu2 }
 0x18e   :  { %v149_v27 = vmul.f32 0.35355338, %v119_v26 }
 0x190   :  { %v151_v28 = vsel %vm97_vm1, %v149_v27, -inf }
 0x191   :  { %152 = vmax.xlane.f32.xlu2 %v151_v28 }
 0x195   :  { %v250_v29 = vpop.f32.mrf.mxu1 }
 0x196   :  { %v281_v30 = vmul.f32 0.35355338, %v250_v29  ;;  %v146_v31 = vpop.f32.mrf.mxu2 }
 0x197   :  { %v150_v32 = vmul.f32 0.35355338, %v146_v31 }
 0x198   :  { %v283_v33 = vsel %vm97_vm1, %v281_v30, -inf }
 0x199   :  { %284 = vmax.xlane.f32.xlu1 %v283_v33  ;;  %v154_v34 = vsel %vm97_vm1, %v150_v32, -inf }
 0x19a   :  { %155 = vmax.xlane.f32.xlu0 %v154_v34 }
 0x19e   :  { %v278_v35 = vpop.f32.mrf.mxu2 }
 0x19f   :  { %v282_v46 = vmul.f32 0.35355338, %v278_v35 }
 0x1a1   :  { %v286_v47 = vsel %vm97_vm1, %v282_v46, -inf }
 0x1a6   :  { %v382_v36 = vpop.f32.mrf.mxu2 }
 0x1a7   :  { %v410_v37 = vpop.f32.mrf.mxu0  ;;  %v413_v48 = vmul.f32 0.35355338, %v382_v36 }
 0x1a8   :  { %v414_v38 = vmul.f32 0.35355338, %v410_v37 }
 0x1a9   :  { %v415_v49 = vsel %vm97_vm1, %v413_v48, -inf }
 0x1aa   :  { %v418_v39 = vsel %vm97_vm1, %v414_v38, -inf }
 0x1ab   :  { %419 = vmax.xlane.f32.xlu1 %v418_v39 }
 0x1ae   :  { %v514_v40 = vpop.f32.mrf.mxu2 }
 0x1af   :  { %v2139_v41 = vmul.f32 0.35355338, %v514_v40  ;;  %v542_v42 = vpop.f32.mrf.mxu0 }
 0x1b0   :  { %v546_v43 = vmul.f32 0.35355338, %v542_v42 }
 0x1b1   :  { %v547_v44 = vsel %vm97_vm1, %v2139_v41, -inf }
 0x1b2   :  { %548 = vmax.xlane.f32.xlu0 %v547_v44  ;;  %v550_v45 = vsel %vm97_vm1, %v546_v43, -inf }
 0x1b3   :  { %551 = vmax.xlane.f32.xlu2 %v550_v45 }
 0x1bb   :  { %287 = vmax.xlane.f32.xlu2 %v286_v47 }
 0x1c3   :  { %416 = vmax.xlane.f32.xlu2 %v415_v49 }
 0x1c6   :  { %1812 = vrot.lane.b32.xlu0 %v1811_v50, %s2007_s22 }
 0x1db   :  { %1807 = vrot.lane.b32.xlu2 %v1811_v50, %s2008_s23 }
 0x1e3   :  { %437 = vrot.lane.b32.xlu2 %v2085_v9, %s2009_s24 }
 0x204   :  { %v153_v51 = vpop.xlane.xlu2 %152 }
 0x205   :  { %v157_v54 = vsub.f32 %v149_v27, %v153_v51 }
 0x207   :  { %v159_v56 = vmul.f32 1.442695, %v157_v54 }
 0x20c   :  { %v285_v52 = vpop.xlane.xlu1 %284 }
 0x20d   :  { %v289_v53 = vsub.f32 %v281_v30, %v285_v52  ;;  %v156_v60 = vpop.xlane.xlu0 %155 }
 0x20e   :  { %v158_v0 = vsub.f32 %v150_v32, %v156_v60 }
 0x20f   :  { %v291_v55 = vmul.f32 1.442695, %v289_v53 }
 0x210   :  { %v161_v2 = vmul.f32 1.442695, %v158_v0 }
 0x211   :  { %1836 = vpow2.f32 %v291_v55 }
 0x212   :  { %1838 = vpow2.f32 %v159_v56 }
 0x217   :  { %v2152_v57 = vpop.eup %1836 }
 0x218   :  { %v295_v58 = vsel %vm97_vm1, %v2152_v57, 0.0  ;;  %v1839_v59 = vpop.eup %1838 }
 0x219   :  { %296 = vadd.xlane.f32.xlu0 %v295_v58  ;;  %v163_v63 = vsel %vm97_vm1, %v1839_v59, 0.0 }
 0x21e   :  { %v420_v61 = vpop.xlane.xlu1 %419 }
 0x21f   :  { %v422_v62 = vsub.f32 %v414_v38, %v420_v61 }
 0x221   :  { %v425_v1 = vmul.f32 1.442695, %v422_v62  ;;  %164 = vadd.xlane.f32.xlu0 %v163_v63 }
 0x223   :  { %1840 = vpow2.f32 %v425_v1 }
 0x224   :  { %1842 = vpow2.f32 %v161_v2 }
 0x225   :  { %v549_v16 = vpop.xlane.xlu0 %548 }
 0x226   :  { %v552_v3 = vpop.xlane.xlu2 %551  ;;  %v553_v25 = vsub.f32 %v2139_v41, %v549_v16  ;;  %v653_v16 = vld [vmem:[%s2496_s2] sm:$0xff] }
 0x227   :  { %v554_v7 = vsub.f32 %v546_v43, %v552_v3 }
 0x228   :  { %v555_v29 = vmul.f32 1.442695, %v553_v25 }
 0x229   :  { %v2157_v8 = vpop.eup %1840  ;;  %v557_v10 = vmul.f32 1.442695, %v554_v7 }
 0x22a   :  { %v430_v12 = vsel %vm97_vm1, %v2157_v8, 0.0  ;;  %v1843_v14 = vpop.eup %1842 }
 0x22b   :  { %1844 = vpow2.f32 %v557_v10  ;;  %431 = vadd.xlane.f32.xlu1 %v430_v12  ;;  %v166_v20 = vsel %vm97_vm1, %v1843_v14, 0.0 }
 0x22e   :  { %v288_v13 = vpop.xlane.xlu2 %287 }
 0x22f   :  { %v290_v15 = vsub.f32 %v282_v46, %v288_v13  ;;  %v656_v13 = vld [vmem:[%s2496_s2 + $0x18] sm:$0xff] }
 0x230   :  { %676 = vmatpush.msrb.mxu2 %v656_v13  ;;  %v740_v13 = vperm.slane %v2082_v6, 4 }
 0x231   :  { %v2161_v17 = vpop.eup %1844  ;;  %v293_v18 = vmul.f32 1.442695, %v290_v15  ;;  %v654_v15 = vld [vmem:[%s2496_s2 + $0x8] sm:$0xff] }
 0x232   :  { %v562_v19 = vsel %vm97_vm1, %v2161_v17, 0.0 }
 0x233   :  { %1846 = vpow2.f32 %v293_v18  ;;  %563 = vadd.xlane.f32.xlu2 %v562_v19  ;;  %167 = vadd.xlane.f32.xlu1 %v166_v20 }
 0x235   :  { %569 = vrot.lane.b32.xlu0 %v2085_v9, %s2010_s25 }
 0x236   :  { %v417_v21 = vpop.xlane.xlu2 %416 }
 0x237   :  { %v421_v22 = vsub.f32 %v413_v48, %v417_v21 }
 0x238   :  { %v1813_v23 = vpop.permute.xlu0 %1812 }
 0x239   :  { %v1847_v24 = vpop.eup %1846  ;;  %v423_v26 = vmul.f32 1.442695, %v421_v22  ;;  %v1815_v27 = vunpack.i.h.bf16 %v1813_v23  ;;  %v1814_v40 = vunpack.i.l.bf16 %v1813_v23 }
 0x23a   :  { %v298_v28 = vsel %vm97_vm1, %v1847_v24, 0.0 }
 0x23b   :  { %1848 = vpow2.f32 %v423_v26  ;;  %352 = vmatpush.msrb.mxu1 %v1815_v27  ;;  %299 = vadd.xlane.f32.xlu1 %v298_v28 }
 0x23c   :  { %1850 = vpow2.f32 %v555_v29  ;;  %v657_v29 = vperm.slane %v2082_v6, 1 }
 0x23d   :  { %595 = vrot.lane.b32.xlu0 %v2091_v11, %s2010_s25 }
 0x23e   :  { %v1808_v30 = vpop.permute.xlu2 %1807 }
 0x23f   :  { %v1809_v31 = vunpack.i.l.bf16 %v1808_v30  ;;  %v1810_v9 = vunpack.i.h.bf16 %v1808_v30 }
 0x241   :  { %v1849_v32 = vpop.eup %1848  ;;  %194 = vmatpush.msra.mxu3 %v1809_v31 }
 0x242   :  { %v427_v33 = vsel %vm97_vm1, %v1849_v32, 0.0  ;;  %v1851_v34 = vpop.eup %1850 }
 0x243   :  { %220 = vmatpush.msrb.mxu3 %v1810_v9  ;;  %428 = vadd.xlane.f32.xlu1 %v427_v33  ;;  %v559_v35 = vsel %vm97_vm1, %v1851_v34, 0.0 }
 0x246   :  { %v438_v46 = vpop.permute.xlu2 %437 }
 0x24b   :  { %560 = vadd.xlane.f32.xlu1 %v559_v35 }
 0x264   :  { %463 = vrot.lane.b32.xlu1 %v2091_v11, %s2009_s24 }
 0x28c   :  { %v297_v36 = vpop.xlane.xlu0 %296 }
 0x294   :  { %v165_v37 = vpop.xlane.xlu0 %164 }
 0x295   :  { %1852 = vrcp.f32 %v165_v37  ;;  %v2013_v37 = vmov 32.0  }
 0x29b   :  { %v1853_v38 = vpop.eup %1852 }
 0x29c   :  { %v171_v39 = vmul.f32 %v1853_v38, %v1839_v59 }
 0x29e   :  { %1709 = vmatmul.msk.f32.vlgmr.msra.gmra.mxu3 %vm97_vm1, %v171_v39  ;;  %v432_v41 = vpop.xlane.xlu1 %431 }
 0x29f   :  { %326 = vmatpush.msra.mxu3 %v1814_v40 }
 0x2a6   :  { %v168_v42 = vpop.xlane.xlu1 %167  ;;  %v564_v58 = vpop.xlane.xlu2 %563 }
 0x2a7   :  { %1854 = vrcp.f32 %v168_v42  ;;  %v570_v51 = vpop.permute.xlu0 %569 }
 0x2a8   :  { %1856 = vrcp.f32 %v297_v36 }
 0x2ad   :  { %v1855_v43 = vpop.eup %1854 }
 0x2ae   :  { %v300_v44 = vpop.xlane.xlu1 %299  ;;  %v172_v45 = vmul.f32 %v1855_v43, %v1843_v14  ;;  %v1857_v11 = vpop.eup %1856  ;;  %v655_v14 = vld [vmem:[%s2496_s2 + $0x10] sm:$0xff] }
 0x2af   :  { %1858 = vrcp.f32 %v300_v44  ;;  %v303_v50 = vmul.f32 %v1857_v11, %v2152_v57  ;;  %v596_v61 = vpop.permute.xlu0 %595  ;;  %677 = vmatpush.msrb.mxu2 %v655_v14 }
 0x2b0   :  { %1710 = vmatmul.msk.f32.vlgmr.msrb.gmra.mxu3 %vm97_vm1, %v172_v45 }
 0x2b1   :  { %458 = vmatpush.msrb.mxu3 %v438_v46  ;;  %678 = vmatpush.msrb.mxu2 %v654_v15 }
 0x2b3   :  { %679 = vmatpush.msrb.mxu2 %v653_v16  ;;  %v743_v16 = vperm.slane %v2082_v6, 5 }
 0x2b5   :  { %v1859_v47 = vpop.eup %1858 }
 0x2b6   :  { %v429_v48 = vpop.xlane.xlu1 %428  ;;  %v304_v49 = vmul.f32 %v1859_v47, %v1847_v24 }
 0x2b7   :  { %1860 = vrcp.f32 %v429_v48 }
 0x2b8   :  { %1716 = vmatmul.msk.f32.vlgmr.msrb.gmra.mxu1 %vm97_vm1, %v304_v49  ;;  %1715 = vmatmul.msk.f32.vlgmr.msra.gmra.mxu3 %vm97_vm1, %v303_v50 }
 0x2b9   :  { %590 = vmatpush.msra.mxu3 %v570_v51  ;;  %v749_v51 = vld [vmem:[%s2497_s3 + $0x18] sm:$0xff] }
 0x2ba   :  { %769 = vmatpush.msrb.mxu0 %v749_v51 }
 0x2bd   :  { %v1861_v52 = vpop.eup %1860 }
 0x2be   :  { %v435_v53 = vmul.f32 %v1861_v52, %v1849_v32  ;;  %v561_v54 = vpop.xlane.xlu1 %560  ;;  %v748_v52 = vld [vmem:[%s2497_s3 + $0x10] sm:$0xff] }
 0x2bf   :  { %1862 = vrcp.f32 %v561_v54  ;;  %770 = vmatpush.msrb.mxu0 %v748_v52  ;;  %v746_v54 = vld [vmem:[%s2497_s3] sm:$0xff] }
 0x2c0   :  { %1721 = vmatmul.msk.f32.vlgmr.msrb.gmra.mxu3 %vm97_vm1, %v435_v53  ;;  %1864 = vrcp.f32 %v432_v41  ;;  %v747_v53 = vld [vmem:[%s2497_s3 + $0x8] sm:$0xff] }
 0x2c1   :  { %1866 = vrcp.f32 %v564_v58  ;;  %771 = vmatpush.msrb.mxu0 %v747_v53 }
 0x2c2   :  { %1868 = vrcp.f32 %v2013_v37 }
 0x2c3   :  { %772 = vmatpush.msrb.mxu0 %v746_v54 }
 0x2c5   :  { %v1863_v55 = vpop.eup %1862 }
 0x2c6   :  { %v567_v56 = vmul.f32 %v1863_v55, %v1851_v34  ;;  %v1865_v57 = vpop.eup %1864 }
 0x2c7   :  { %v436_v59 = vmul.f32 %v1865_v57, %v2157_v8  ;;  %v1867_v62 = vpop.eup %1866 }
 0x2c8   :  { %1727 = vmatmul.msk.f32.vlgmr.msra.gmra.mxu3 %vm97_vm1, %v567_v56  ;;  %v568_v63 = vmul.f32 %v1867_v62, %v2161_v17  ;;  %v1869_v38 = vpop.eup %1868  ;;  %v788_v62 = vld [vmem:[%s2498_s4 + $0x30] sm:$0xff] }
 0x2c9   :  { %v696_v39 = vmul.f32 32.0, %v1869_v38  ;;  %vm700_vm4 = vweird.f32 %v1869_v38 }
 0x2cb   :  { %v697_v40 = vsub.f32 1.0, %v696_v39 }
 0x2cd   :  { %v698_v41 = vmul.f32 %v1869_v38, %v697_v40 }
 0x2cf   :  { %v699_v42 = vadd.f32 %v1869_v38, %v698_v41 }
 0x2d1   :  { %v2218_v43 = vsel %vm700_vm4, %v1869_v38, %v699_v42  ;;  %v790_v38 = vperm.slane %v2082_v6, 3 }
 0x2d6   :  { %v464_v60 = vpop.permute.xlu1 %463 }
 0x2d7   :  { %484 = vmatpush.msra.mxu1 %v464_v60 }
 0x2d8   :  { %1722 = vmatmul.msk.f32.vlgmr.msra.gmra.mxu1 %vm97_vm1, %v436_v59 }
 0x2d9   :  { %616 = vmatpush.msrb.mxu1 %v596_v61  ;;  %v789_v61 = vld [vmem:[%s2498_s4 + $0x38] sm:$0xff] }
 0x2da   :  { %806 = vmatpush.msrb.mxu3 %v789_v61 }
 0x2dc   :  { %807 = vmatpush.msrb.mxu3 %v788_v62 }
 0x2e0   :  { %1728 = vmatmul.msk.f32.vlgmr.msrb.gmra.mxu1 %vm97_vm1, %v568_v63 }
 0x321   :  { %v196_v0 = vpop.f32.mrf.mxu3 }
 0x333   :  { %v222_v1 = vpop.f32.mrf.mxu3 }
 0x335   :  { %v354_v7 = vpop.f32.mrf.mxu1 }
 0x33b   :  { %v328_v2 = vpop.f32.mrf.mxu3 }
 0x33c   :  { %623 = vrot.lane.b32.xlu0 %v328_v2, %s1998_s30 }
 0x343   :  { %v460_v3 = vpop.f32.mrf.mxu3 }
 0x344   :  { %631 = vrot.lane.b32.xlu0 %v460_v3, %s2011_s26 }
 0x34b   :  { %v592_v8 = vpop.f32.mrf.mxu3 }
 0x34c   :  { %625 = vrot.lane.b32.xlu0 %v354_v7, %s1998_s30  ;;  %639 = vrot.lane.b32.xlu1 %v592_v8, %s2012_s27  ;;  %v786_v7 = vld [vmem:[%s2498_s4 + $0x20] sm:$0xff] }
 0x355   :  { %v486_v10 = vpop.f32.mrf.mxu1 }
 0x356   :  { %633 = vrot.lane.b32.xlu1 %v486_v10, %s2011_s26 }
 0x35d   :  { %v618_v12 = vpop.f32.mrf.mxu1 }
 0x35e   :  { %641 = vrot.lane.b32.xlu0 %v618_v12, %s2012_s27  ;;  %v785_v12 = vld [vmem:[%s2498_s4 + $0x18] sm:$0xff] }
 0x3ae   :  { %v624_v17 = vpop.permute.xlu0 %623 }
 0x3af   :  { %v645_v19 = vsel %vm97_vm1, %v196_v0, %v624_v17  ;;  %v787_v0 = vld [vmem:[%s2498_s4 + $0x28] sm:$0xff] }
 0x3b0   :  { %808 = vmatpush.msrb.mxu3 %v787_v0 }
 0x3b2   :  { %809 = vmatpush.msrb.mxu3 %v786_v7 }
 0x3b4   :  { %810 = vmatpush.msrb.mxu3 %v785_v12  ;;  %v867_v12 = vperm.slane %v2082_v6, 6 }
 0x3b6   :  { %v632_v18 = vpop.permute.xlu0 %631 }
 0x3b7   :  { %v648_v20 = vsel %vm647_vm2, %v645_v19, %v632_v18 }
 0x3be   :  { %v640_v21 = vpop.permute.xlu1 %639  ;;  %v626_v23 = vpop.permute.xlu0 %625 }
 0x3bf   :  { %v651_v22 = vsel %vm650_vm3, %v648_v20, %v640_v21  ;;  %v646_v25 = vsel %vm97_vm1, %v222_v1, %v626_v23 }
 0x3c0   :  { %1729 = vmatmul.msk.f32.vlgmr.msrb.gmra.mxu2 %vm64_vm0, %v651_v22 }
 0x3c8   :  { %v634_v24 = vpop.permute.xlu1 %633 }
 0x3c9   :  { %v649_v26 = vsel %vm647_vm2, %v646_v25, %v634_v24 }
 0x3d0   :  { %v642_v27 = vpop.permute.xlu0 %641 }
 0x3d1   :  { %v652_v28 = vsel %vm650_vm3, %v649_v26, %v642_v27 }
 0x3d2   :  { %1730 = vmatmul.msk.f32.gmra.mxu2 %vm64_vm0, %v652_v28 }
 0x443   :  { %v681_v30 = vpop.f32.mrf.mxu2 }
 0x444   :  { %v682_v31 = vadd.f32 %v681_v30, %v657_v29  ;;  %v783_v30 = vld [vmem:[%s2498_s4 + $0x8] sm:$0xff] }
 0x446   :  { %v687_v9 = vadd.f32 %v682_v31, %v2074_v4  ;;  %v782_v31 = vld [vmem:[%s2498_s4] sm:$0xff] }
 0x448   :  { %v689_v32 = vsel %vm64_vm0, %v687_v9, 0.0 }
 0x449   :  { %690 = vadd.xlane.f32.xlu2 %v689_v32 }
 0x455   :  { %v684_v33 = vpop.f32.mrf.mxu2 }
 0x456   :  { %v685_v34 = vadd.f32 %v684_v33, %v657_v29  ;;  %v784_v29 = vld [vmem:[%s2498_s4 + $0x10] sm:$0xff] }
 0x457   :  { %811 = vmatpush.msrb.mxu3 %v784_v29 }
 0x458   :  { %v688_v35 = vadd.f32 %v685_v34, %v2078_v5 }
 0x459   :  { %812 = vmatpush.msrb.mxu3 %v783_v30 }
 0x45a   :  { %v692_v36 = vsel %vm64_vm0, %v688_v35, 0.0 }
 0x45b   :  { %693 = vadd.xlane.f32.xlu1 %v692_v36  ;;  %813 = vmatpush.msrb.mxu3 %v782_v31 }
 0x4bc   :  { %v691_v4 = vpop.xlane.xlu2 %690 }
 0x4bd   :  { %v702_v44 = vmul.f32 %v2218_v43, %v691_v4 }
 0x4bf   :  { %v704_v45 = vsub.f32 %v687_v9, %v702_v44  ;;  %v750_v9 = vperm.slane %v2082_v6, 2 }
 0x4c1   :  { %v706_v46 = vmul.f32 %v704_v45, %v704_v45 }
 0x4c3   :  { %v708_v5 = vsel %vm64_vm0, %v706_v46, 0.0 }
 0x4c4   :  { %709 = vadd.xlane.f32.xlu0 %v708_v5 }
 0x4ce   :  { %v694_v11 = vpop.xlane.xlu1 %693 }
 0x4cf   :  { %v703_v47 = vmul.f32 %v2218_v43, %v694_v11 }
 0x4d1   :  { %v705_v48 = vsub.f32 %v688_v35, %v703_v47 }
 0x4d3   :  { %v707_v49 = vmul.f32 %v705_v48, %v705_v48 }
 0x4d5   :  { %v711_v50 = vsel %vm64_vm0, %v707_v49, 0.0 }
 0x4d6   :  { %712 = vadd.xlane.f32.xlu2 %v711_v50 }
 0x537   :  { %v710_v55 = vpop.xlane.xlu0 %709 }
 0x538   :  { %v714_v56 = vmul.f32 %v710_v55, %v2218_v43  ;;  %v1738_v55 = vld [vmem:[%s2495_s1 + $0x38] sm:$0xff] }
 0x539   :  { %899 = vmatpush.msra.mxu1 %v1738_v55 }
 0x53a   :  { %v716_v58 = vadd.f32 1e-05, %v714_v56  ;;  %v1737_v56 = vld [vmem:[%s2495_s1 + $0x30] sm:$0xff] }
 0x53b   :  { %900 = vmatpush.msra.mxu1 %v1737_v56 }
 0x53c   :  { %1870 = vrsqrt.f32 %v716_v58  ;;  %vm724_vm6 = vweird.f32 %v716_v58 }
 0x542   :  { %v1871_v57 = vpop.eup %1870 }
 0x543   :  { %v719_v59 = vmul.f32 %v1871_v57, %v716_v58  ;;  %vm725_vm5 = vweird.f32 %v1871_v57  ;;  %v1736_v58 = vld [vmem:[%s2495_s1 + $0x28] sm:$0xff] }
 0x544   :  { %vm726_vm7 = vmor %vm724_vm6, %vm725_vm5  ;;  %901 = vmatpush.msra.mxu1 %v1736_v58 }
 0x545   :  { %v720_v60 = vmul.f32 %v1871_v57, %v719_v59 }
 0x547   :  { %v721_v63 = vmul.f32 0.5, %v720_v60 }
 0x549   :  { %v713_v1 = vpop.xlane.xlu2 %712  ;;  %v722_v2 = vsub.f32 1.5, %v721_v63 }
 0x54a   :  { %v715_v3 = vmul.f32 %v713_v1, %v2218_v43 }
 0x54b   :  { %v723_v8 = vmul.f32 %v1871_v57, %v722_v2 }
 0x54c   :  { %v717_v10 = vadd.f32 1e-05, %v715_v3 }
 0x54d   :  { %v727_v14 = vsel %vm726_vm7, %v1871_v57, %v723_v8  ;;  %v1735_v57 = vld [vmem:[%s2495_s1 + $0x20] sm:$0xff] }
 0x54e   :  { %1872 = vrsqrt.f32 %v717_v10  ;;  %v738_v15 = vmul.f32 %v727_v14, %v704_v45  ;;  %vm734_vm9 = vweird.f32 %v717_v10  ;;  %902 = vmatpush.msra.mxu1 %v1735_v57 }
 0x550   :  { %v741_v17 = vmul.f32 %v740_v13, %v738_v15  ;;  %v870_v15 = vperm.slane %v2082_v6, 7  ;;  %v2300_v6 = vld [vmem:[#allocation5 + $0x8] sm:$0xff] }
 0x552   :  { %v744_v18 = vadd.f32 %v743_v16, %v741_v17 }
 0x554   :  { %v1873_v19 = vpop.eup %1872  ;;  %1731 = vmatmul.msk.f32.vlgmr.msrb.gmra.mxu0 %vm64_vm0, %v744_v18 }
 0x555   :  { %v729_v20 = vmul.f32 %v1873_v19, %v717_v10  ;;  %vm735_vm8 = vweird.f32 %v1873_v19 }
 0x556   :  { %vm736_vm10 = vmor %vm734_vm9, %vm735_vm8 }
 0x557   :  { %v730_v21 = vmul.f32 %v1873_v19, %v729_v20 }
 0x559   :  { %v731_v22 = vmul.f32 0.5, %v730_v21 }
 0x55b   :  { %v732_v23 = vsub.f32 1.5, %v731_v22 }
 0x55d   :  { %v733_v24 = vmul.f32 %v1873_v19, %v732_v23 }
 0x55f   :  { %v737_v25 = vsel %vm736_vm10, %v1873_v19, %v733_v24 }
 0x560   :  { %v739_v26 = vmul.f32 %v737_v25, %v705_v48 }
 0x562   :  { %v742_v27 = vmul.f32 %v740_v13, %v739_v26 }
 0x564   :  { %v745_v28 = vadd.f32 %v743_v16, %v742_v27 }
 0x566   :  { %1732 = vmatmul.msk.f32.gmra.mxu0 %vm64_vm0, %v745_v28 }
 0x5d1   :  { %v774_v32 = vpop.f32.mrf.mxu0 }
 0x5d2   :  { %v775_v33 = vadd.f32 %v774_v32, %v750_v9 }
 0x5d4   :  { %v780_v34 = vmax.f32 %v775_v33, 0.0 }
 0x5d6   :  { %1733 = vmatmul.msk.f32.vlgmr.msrb.gmra.mxu3 %vm791_vm11, %v780_v34 }
 0x5e3   :  { %v777_v35 = vpop.f32.mrf.mxu0 }
 0x5e4   :  { %v778_v36 = vadd.f32 %v777_v35, %v750_v9 }
 0x5e6   :  { %v781_v37 = vmax.f32 %v778_v36, 0.0 }
 0x5e8   :  { %1734 = vmatmul.msk.f32.gmra.mxu3 %vm791_vm11, %v781_v37 }
 0x659   :  { %v815_v39 = vpop.f32.mrf.mxu3 }
 0x65a   :  { %v816_v40 = vadd.f32 %v815_v39, %v790_v38 }
 0x65c   :  { %v821_v41 = vadd.f32 %v816_v40, %v744_v18 }
 0x65e   :  { %v823_v42 = vsel %vm64_vm0, %v821_v41, 0.0 }
 0x65f   :  { %824 = vadd.xlane.f32.xlu2 %v823_v42 }
 0x66b   :  { %v818_v4 = vpop.f32.mrf.mxu3 }
 0x66c   :  { %v819_v44 = vadd.f32 %v818_v4, %v790_v38 }
 0x66e   :  { %v822_v45 = vadd.f32 %v819_v44, %v745_v28  ;;  %v880_v28 = vperm.slane %v2300_v6, 0 }
 0x670   :  { %v826_v46 = vsel %vm64_vm0, %v822_v45, 0.0 }
 0x671   :  { %827 = vadd.xlane.f32.xlu2 %v826_v46 }
 0x6d2   :  { %v825_v5 = vpop.xlane.xlu2 %824 }
 0x6d3   :  { %v829_v11 = vmul.f32 %v825_v5, %v2218_v43 }
 0x6d5   :  { %v831_v47 = vsub.f32 %v821_v41, %v829_v11 }
 0x6d7   :  { %v833_v48 = vmul.f32 %v831_v47, %v831_v47 }
 0x6d9   :  { %v835_v49 = vsel %vm64_vm0, %v833_v48, 0.0 }
 0x6da   :  { %836 = vadd.xlane.f32.xlu2 %v835_v49 }
 0x6e4   :  { %v828_v50 = vpop.xlane.xlu2 %827 }
 0x6e5   :  { %v830_v51 = vmul.f32 %v828_v50, %v2218_v43 }
 0x6e7   :  { %v832_v52 = vsub.f32 %v822_v45, %v830_v51 }
 0x6e9   :  { %v834_v53 = vmul.f32 %v832_v52, %v832_v52 }
 0x6eb   :  { %v838_v54 = vsel %vm64_vm0, %v834_v53, 0.0 }
 0x6ec   :  { %839 = vadd.xlane.f32.xlu2 %v838_v54 }
 0x74d   :  { %v837_v59 = vpop.xlane.xlu2 %836 }
 0x74e   :  { %v841_v60 = vmul.f32 %v837_v59, %v2218_v43 }
 0x750   :  { %v843_v61 = vadd.f32 1e-05, %v841_v60 }
 0x752   :  { %1874 = vrsqrt.f32 %v843_v61  ;;  %vm851_vm13 = vweird.f32 %v843_v61 }
 0x758   :  { %v1875_v62 = vpop.eup %1874 }
 0x759   :  { %v846_v63 = vmul.f32 %v1875_v62, %v843_v61  ;;  %vm852_vm12 = vweird.f32 %v1875_v62 }
 0x75a   :  { %vm853_vm14 = vmor %vm851_vm13, %vm852_vm12 }
 0x75b   :  { %v847_v0 = vmul.f32 %v1875_v62, %v846_v63 }
 0x75d   :  { %v848_v1 = vmul.f32 0.5, %v847_v0 }
 0x75f   :  { %v840_v2 = vpop.xlane.xlu2 %839  ;;  %v849_v3 = vsub.f32 1.5, %v848_v1 }
 0x760   :  { %v842_v7 = vmul.f32 %v840_v2, %v2218_v43 }
 0x761   :  { %v850_v8 = vmul.f32 %v1875_v62, %v849_v3 }
 0x762   :  { %v844_v10 = vadd.f32 1e-05, %v842_v7 }
 0x763   :  { %v854_v13 = vsel %vm853_vm14, %v1875_v62, %v850_v8 }
 0x764   :  { %1876 = vrsqrt.f32 %v844_v10  ;;  %v865_v14 = vmul.f32 %v854_v13, %v831_v47  ;;  %vm861_vm4 = vweird.f32 %v844_v10 }
 0x766   :  { %v868_v16 = vmul.f32 %v867_v12, %v865_v14 }
 0x768   :  { %v2292_v17 = vadd.f32 %v870_v15, %v868_v16 }
 0x76a   :  { %v1877_v18 = vpop.eup %1876  ;;  %1739 = vmatmul.msk.f32.vlgmr.msra.gmra.mxu1 %vm64_vm0, %v2292_v17 }
 0x76b   :  { %v856_v19 = vmul.f32 %v1877_v18, %v844_v10  ;;  %vm862_vm15 = vweird.f32 %v1877_v18 }
 0x76c   :  { %vm863_vm5 = vmor %vm861_vm4, %vm862_vm15 }
 0x76d   :  { %v857_v20 = vmul.f32 %v1877_v18, %v856_v19 }
 0x76f   :  { %v858_v21 = vmul.f32 0.5, %v857_v20 }
 0x771   :  { %v859_v22 = vsub.f32 1.5, %v858_v21 }
 0x773   :  { %v860_v23 = vmul.f32 %v1877_v18, %v859_v22 }
 0x775   :  { %v864_v24 = vsel %vm863_vm5, %v1877_v18, %v860_v23 }
 0x776   :  { %v866_v25 = vmul.f32 %v864_v24, %v832_v52 }
 0x778   :  { %v869_v26 = vmul.f32 %v867_v12, %v866_v25 }
 0x77a   :  { %v2296_v27 = vadd.f32 %v870_v15, %v869_v26 }
 0x77c   :  { %1740 = vmatmul.msk.f32.gmra.mxu1 %vm64_vm0, %v2296_v27 }
 0x7e7   :  { %v904_v29 = vpop.f32.mrf.mxu1 }
 0x7e8   :  { %v2303_v30 = vadd.f32 %v904_v29, %v880_v28 }
 0x7ea   :  { %911 = vrot.lane.b32.xlu1 %v2303_v30, %s2001_s16 }
 0x7f2   :  { %1042 = vrot.lane.b32.xlu1 %v2303_v30, %s2000_s15 }
 0x7f9   :  { %v907_v31 = vpop.f32.mrf.mxu1 }
 0x7fa   :  { %v2309_v9 = vadd.f32 %v907_v31, %v880_v28 }
 0x7fc   :  { %1200 = vrot.lane.b32.xlu1 %v2309_v9, %s2005_s20  ;;  %1070 = vrot.lane.b32.xlu2 %v2309_v9, %s2000_s15  ;;  %v1816_v7 = vpack.i.bf16 %v2309_v9, %v2303_v30 }
 0x7fd   :  { %938 = vrot.lane.b32.xlu0 %v2309_v9, %s2001_s16 }
 0x804   :  { %1334 = vrot.lane.b32.xlu1 %v2309_v9, %s2004_s19  ;;  %1040 = vrot.lane.b32.xlu2 %v2303_v30, %s2003_s18 }
 0x805   :  { %1068 = vrot.lane.b32.xlu0 %v2309_v9, %s2003_s18 }
 0x80c   :  { %1304 = vrot.lane.b32.xlu1 %v2303_v30, %s2006_s21  ;;  %1174 = vrot.lane.b32.xlu2 %v2303_v30, %s2002_s17 }
 0x80d   :  { %1202 = vrot.lane.b32.xlu0 %v2309_v9, %s2002_s17 }
 0x814   :  { %1332 = vrot.lane.b32.xlu2 %v2309_v9, %s2006_s21 }
 0x815   :  { %1172 = vrot.lane.b32.xlu0 %v2303_v30, %s2005_s20 }
 0x81d   :  { %1306 = vrot.lane.b32.xlu0 %v2303_v30, %s2004_s19 }
 0x856   :  { %v1071_v32 = vpop.permute.xlu2 %1070 }
 0x857   :  { %1749 = vmatpush.xpose.msk.msra.mxu3 %vm97_vm1, %v1071_v32 }
 0x85c   :  { %v912_v33 = vpop.permute.xlu1 %911 }
 0x85d   :  { %1741 = vmatpush.xpose.msk.msra.mxu2 %vm97_vm1, %v912_v33 }
 0x85e   :  { %v1041_v34 = vpop.permute.xlu2 %1040 }
 0x860   :  { %1742 = vmatmul.msk.f32.vlgmr.msra.gmra.mxu2 %vm97_vm1, %v2303_v30 }
 0x864   :  { %v1043_v35 = vpop.permute.xlu1 %1042 }
 0x866   :  { %v1175_v37 = vpop.permute.xlu2 %1174 }
 0x86e   :  { %v1201_v38 = vpop.permute.xlu1 %1200  ;;  %v1333_v4 = vpop.permute.xlu2 %1332 }
 0x86f   :  { %v939_v36 = vpop.permute.xlu0 %938 }
 0x870   :  { %1743 = vmatpush.xpose.msk.msra.mxu0 %vm97_vm1, %v939_v36 }
 0x873   :  { %1744 = vmatmul.msk.f32.vlgmr.msra.gmra.mxu0 %vm97_vm1, %v2309_v9 }
 0x874   :  { %1747 = vmatpush.xpose.msk.msrb.mxu0 %vm97_vm1, %v1043_v35 }
 0x876   :  { %v1335_v41 = vpop.permute.xlu1 %1334 }
 0x877   :  { %v1069_v39 = vpop.permute.xlu0 %1068 }
 0x878   :  { %1753 = vmatpush.xpose.msk.msra.mxu0 %vm97_vm1, %v1175_v37  ;;  %1750 = vmatmul.msk.f32.vlgmr.msra.gmra.mxu3 %vm97_vm1, %v1069_v39 }
 0x87b   :  { %1748 = vmatmul.msk.f32.vlgmr.msrb.gmra.mxu0 %vm97_vm1, %v1041_v34 }
 0x87e   :  { %v1305_v45 = vpop.permute.xlu1 %1304 }
 0x87f   :  { %v1203_v40 = vpop.permute.xlu0 %1202 }
 0x880   :  { %1755 = vmatpush.xpose.msk.msrb.mxu3 %vm97_vm1, %v1203_v40 }
 0x883   :  { %1756 = vmatmul.msk.f32.vlgmr.msrb.gmra.mxu3 %vm97_vm1, %v1201_v38 }
 0x884   :  { %1761 = vmatpush.xpose.msk.msra.mxu3 %vm97_vm1, %v1335_v41 }
 0x887   :  { %v1173_v42 = vpop.permute.xlu0 %1172 }
 0x888   :  { %1754 = vmatmul.msk.f32.vlgmr.msra.gmra.mxu0 %vm97_vm1, %v1173_v42 }
 0x88b   :  { %1762 = vmatmul.msk.f32.vlgmr.msra.gmra.mxu3 %vm97_vm1, %v1333_v4 }
 0x88f   :  { %v1307_v44 = vpop.permute.xlu0 %1306 }
 0x890   :  { %1759 = vmatpush.xpose.msk.msrb.mxu0 %vm97_vm1, %v1307_v44 }
 0x893   :  { %1760 = vmatmul.msk.f32.vlgmr.msrb.gmra.mxu0 %vm97_vm1, %v1305_v45 }
 0x8e3   :  { %v934_v46 = vpop.f32.mrf.mxu2 }
 0x8e4   :  { %v964_v5 = vmul.f32 0.35355338, %v934_v46 }
 0x8e6   :  { %v966_v11 = vsel %vm97_vm1, %v964_v5, -inf }
 0x8e7   :  { %967 = vmax.xlane.f32.xlu2 %v966_v11 }
 0x8f0   :  { %v961_v47 = vpop.f32.mrf.mxu0 }
 0x8f1   :  { %v965_v48 = vmul.f32 0.35355338, %v961_v47 }
 0x8f3   :  { %v969_v49 = vsel %vm97_vm1, %v965_v48, -inf }
 0x8f4   :  { %970 = vmax.xlane.f32.xlu0 %v969_v49 }
 0x8f8   :  { %v1065_v50 = vpop.f32.mrf.mxu0 }
 0x8f9   :  { %v1096_v51 = vmul.f32 0.35355338, %v1065_v50 }
 0x8fb   :  { %v1093_v52 = vpop.f32.mrf.mxu3  ;;  %v1098_v53 = vsel %vm97_vm1, %v1096_v51, -inf }
 0x8fc   :  { %v1097_v54 = vmul.f32 0.35355338, %v1093_v52  ;;  %1099 = vmax.xlane.f32.xlu1 %v1098_v53 }
 0x8fe   :  { %v1101_v55 = vsel %vm97_vm1, %v1097_v54, -inf }
 0x8ff   :  { %1102 = vmax.xlane.f32.xlu2 %v1101_v55 }
 0x905   :  { %v1197_v56 = vpop.f32.mrf.mxu0 }
 0x906   :  { %v1228_v58 = vmul.f32 0.35355338, %v1197_v56  ;;  %v1225_v57 = vpop.f32.mrf.mxu3 }
 0x907   :  { %v1229_v59 = vmul.f32 0.35355338, %v1225_v57 }
 0x908   :  { %v1230_v60 = vsel %vm97_vm1, %v1228_v58, -inf }
 0x909   :  { %1231 = vmax.xlane.f32.xlu0 %v1230_v60  ;;  %v1233_v61 = vsel %vm97_vm1, %v1229_v59, -inf }
 0x90a   :  { %1234 = vmax.xlane.f32.xlu1 %v1233_v61 }
 0x90e   :  { %v1357_v62 = vpop.f32.mrf.mxu3 }
 0x90f   :  { %v1361_v63 = vmul.f32 0.35355338, %v1357_v62 }
 0x910   :  { %v1329_v0 = vpop.f32.mrf.mxu0 }
 0x911   :  { %v1360_v1 = vmul.f32 0.35355338, %v1329_v0  ;;  %v1365_v2 = vsel %vm97_vm1, %v1361_v63, -inf }
 0x912   :  { %1366 = vmax.xlane.f32.xlu0 %v1365_v2 }
 0x913   :  { %v1362_v3 = vsel %vm97_vm1, %v1360_v1, -inf }
 0x914   :  { %1363 = vmax.xlane.f32.xlu2 %v1362_v3 }
 0x923   :  { %1817 = vrot.lane.b32.xlu1 %v1816_v7, %s2008_s23 }
 0x95a   :  { %v968_v8 = vpop.xlane.xlu2 %967 }
 0x95b   :  { %v972_v10 = vsub.f32 %v964_v5, %v968_v8 }
 0x95d   :  { %v974_v12 = vmul.f32 1.442695, %v972_v10 }
 0x95f   :  { %1878 = vpow2.f32 %v974_v12 }
 0x965   :  { %v2364_v13 = vpop.eup %1878 }
 0x966   :  { %v978_v15 = vsel %vm97_vm1, %v2364_v13, 0.0 }
 0x967   :  { %v971_v14 = vpop.xlane.xlu0 %970  ;;  %979 = vadd.xlane.f32.xlu1 %v978_v15 }
 0x968   :  { %v973_v16 = vsub.f32 %v965_v48, %v971_v14 }
 0x96a   :  { %v976_v18 = vmul.f32 1.442695, %v973_v16 }
 0x96c   :  { %1880 = vpow2.f32 %v976_v18 }
 0x96f   :  { %v1100_v19 = vpop.xlane.xlu1 %1099 }
 0x970   :  { %v1104_v20 = vsub.f32 %v1096_v51, %v1100_v19 }
 0x972   :  { %v1881_v21 = vpop.eup %1880  ;;  %v1106_v22 = vmul.f32 1.442695, %v1104_v20  ;;  %v1103_v23 = vpop.xlane.xlu2 %1102 }
 0x973   :  { %v1105_v24 = vsub.f32 %v1097_v54, %v1103_v23  ;;  %v981_v25 = vsel %vm97_vm1, %v1881_v21, 0.0 }
 0x974   :  { %1882 = vpow2.f32 %v1106_v22  ;;  %982 = vadd.xlane.f32.xlu2 %v981_v25 }
 0x975   :  { %v1108_v26 = vmul.f32 1.442695, %v1105_v24 }
 0x977   :  { %1884 = vpow2.f32 %v1108_v26 }
 0x97a   :  { %v2369_v28 = vpop.eup %1882 }
 0x97b   :  { %v1110_v29 = vsel %vm97_vm1, %v2369_v28, 0.0 }
 0x97c   :  { %1111 = vadd.xlane.f32.xlu0 %v1110_v29  ;;  %v1232_v31 = vpop.xlane.xlu0 %1231 }
 0x97d   :  { %v1885_v30 = vpop.eup %1884  ;;  %v1235_v9 = vpop.xlane.xlu1 %1234  ;;  %v1236_v34 = vsub.f32 %v1228_v58, %v1232_v31 }
 0x97e   :  { %v1237_v32 = vsub.f32 %v1229_v59, %v1235_v9  ;;  %v1113_v33 = vsel %vm97_vm1, %v1885_v30, 0.0 }
 0x97f   :  { %1114 = vadd.xlane.f32.xlu2 %v1113_v33  ;;  %v1238_v36 = vmul.f32 1.442695, %v1236_v34 }
 0x980   :  { %v1240_v35 = vmul.f32 1.442695, %v1237_v32  ;;  %1827 = vrot.lane.b32.xlu1 %v1816_v7, %s2009_s24 }
 0x982   :  { %1886 = vpow2.f32 %v1240_v35  ;;  %v1768_v35 = vld [vmem:[%s2496_s2 + $0x38] sm:$0xff] }
 0x983   :  { %1888 = vpow2.f32 %v1238_v36  ;;  %v1767_v36 = vld [vmem:[%s2496_s2 + $0x30] sm:$0xff]  ;;  %1490 = vmatpush.msra.mxu0 %v1768_v35  ;;  %v1550_v35 = vperm.slane %v2300_v6, 5 }
 0x985   :  { %v1367_v42 = vpop.xlane.xlu0 %1366  ;;  %1491 = vmatpush.msra.mxu0 %v1767_v36 }
 0x986   :  { %v1369_v44 = vsub.f32 %v1361_v63, %v1367_v42 }
 0x987   :  { %v1364_v37 = vpop.xlane.xlu2 %1363 }
 0x988   :  { %v2375_v38 = vpop.eup %1886  ;;  %v1368_v39 = vsub.f32 %v1360_v1, %v1364_v37  ;;  %1832 = vrot.lane.b32.xlu1 %v1816_v7, %s2010_s25  ;;  %v1372_v46 = vmul.f32 1.442695, %v1369_v44  ;;  %v1766_v37 = vld [vmem:[%s2496_s2 + $0x28] sm:$0xff] }
 0x989   :  { %v1245_v40 = vsel %vm97_vm1, %v2375_v38, 0.0  ;;  %v1889_v4 = vpop.eup %1888  ;;  %1492 = vmatpush.msra.mxu0 %v1766_v37 }
 0x98a   :  { %1246 = vadd.xlane.f32.xlu0 %v1245_v40  ;;  %v1370_v41 = vmul.f32 1.442695, %v1368_v39  ;;  %v1242_v45 = vsel %vm97_vm1, %v1889_v4, 0.0 }
 0x98c   :  { %1890 = vpow2.f32 %v1370_v41 }
 0x98d   :  { %1892 = vpow2.f32 %v1372_v46 }
 0x992   :  { %1243 = vadd.xlane.f32.xlu0 %v1242_v45  ;;  %v1891_v11 = vpop.eup %1890 }
 0x993   :  { %v1374_v49 = vsel %vm97_vm1, %v1891_v11, 0.0  ;;  %v1893_v50 = vpop.eup %1892 }
 0x994   :  { %v1377_v51 = vsel %vm97_vm1, %v1893_v50, 0.0 }
 0x995   :  { %v1818_v5 = vpop.permute.xlu1 %1817 }
 0x996   :  { %v1820_v47 = vunpack.i.h.bf16 %v1818_v5  ;;  %v1819_v48 = vunpack.i.l.bf16 %v1818_v5 }
 0x997   :  { %1822 = vrot.lane.b32.xlu2 %v1816_v7, %s2007_s22 }
 0x998   :  { %1009 = vmatpush.msrb.mxu1 %v1819_v48  ;;  %1035 = vmatpush.msrb.mxu2 %v1820_v47 }
 0x99a   :  { %1375 = vadd.xlane.f32.xlu0 %v1374_v49  ;;  %v1471_v49 = vperm.slane %v2300_v6, 1 }
 0x9a2   :  { %1378 = vadd.xlane.f32.xlu0 %v1377_v51 }
 0x9da   :  { %v980_v52 = vpop.xlane.xlu1 %979 }
 0x9db   :  { %1894 = vrcp.f32 %v980_v52 }
 0x9e1   :  { %v1895_v53 = vpop.eup %1894 }
 0x9e2   :  { %v986_v54 = vmul.f32 %v1895_v53, %v2364_v13 }
 0x9e4   :  { %1745 = vmatmul.msk.f32.vlgmr.msrb.gmra.mxu1 %vm97_vm1, %v986_v54 }
 0x9e7   :  { %v983_v55 = vpop.xlane.xlu2 %982 }
 0x9e8   :  { %1896 = vrcp.f32 %v983_v55 }
 0x9ee   :  { %v1897_v56 = vpop.eup %1896 }
 0x9ef   :  { %v987_v58 = vmul.f32 %v1897_v56, %v1881_v21  ;;  %v1112_v57 = vpop.xlane.xlu0 %1111 }
 0x9f0   :  { %1898 = vrcp.f32 %v1112_v57 }
 0x9f1   :  { %1746 = vmatmul.msk.f32.vlgmr.msrb.gmra.mxu2 %vm97_vm1, %v987_v58 }
 0x9f2   :  { %v1115_v59 = vpop.xlane.xlu2 %1114  ;;  %v1828_v60 = vpop.permute.xlu1 %1827 }
 0x9f3   :  { %1900 = vrcp.f32 %v1115_v59  ;;  %v1830_v12 = vunpack.i.h.bf16 %v1828_v60  ;;  %v1829_v13 = vunpack.i.l.bf16 %v1828_v60 }
 0x9f6   :  { %v1899_v61 = vpop.eup %1898 }
 0x9f7   :  { %v1118_v3 = vmul.f32 %v1899_v61, %v2369_v28 }
 0x9f9   :  { %v1901_v62 = vpop.eup %1900 }
 0x9fa   :  { %v1823_v63 = vpop.permute.xlu2 %1822  ;;  %v1833_v2 = vpop.permute.xlu1 %1832  ;;  %v1119_v7 = vmul.f32 %v1901_v62, %v1885_v30 }
 0x9fb   :  { %v1825_v0 = vunpack.i.h.bf16 %v1823_v63  ;;  %v1824_v1 = vunpack.i.l.bf16 %v1823_v63  ;;  %v1835_v8 = vunpack.i.h.bf16 %v1833_v2  ;;  %v1834_v10 = vunpack.i.l.bf16 %v1833_v2 }
 0x9fd   :  { %1141 = vmatpush.msra.mxu1 %v1824_v1  ;;  %1167 = vmatpush.msra.mxu2 %v1825_v0  ;;  %v1247_v14 = vpop.xlane.xlu0 %1246 }
 0x9fe   :  { %1902 = vrcp.f32 %v1247_v14  ;;  %1751 = vmatmul.msk.f32.vlgmr.msra.gmra.mxu1 %vm97_vm1, %v1118_v3  ;;  %1752 = vmatmul.msk.f32.vlgmr.msra.gmra.mxu2 %vm97_vm1, %v1119_v7  ;;  %v1773_v3 = vld [vmem:[%s2497_s3 + $0x30] sm:$0xff]  ;;  %v1772_v7 = vld [vmem:[%s2497_s3 + $0x28] sm:$0xff]  ;;  %v1784_v14 = vld [vmem:[%s2498_s4 + $0x78] sm:$0xff] }
 0x9ff   :  { %1273 = vmatpush.msrb.mxu1 %v1829_v13  ;;  %1299 = vmatpush.msrb.mxu2 %v1830_v12 }
 0xa01   :  { %1405 = vmatpush.msra.mxu1 %v1834_v10  ;;  %1431 = vmatpush.msra.mxu2 %v1835_v8  ;;  %v1771_v8 = vld [vmem:[%s2497_s3 + $0x20] sm:$0xff] }
 0xa04   :  { %v1903_v15 = vpop.eup %1902 }
 0xa05   :  { %v1251_v16 = vmul.f32 %v1903_v15, %v2375_v38  ;;  %v1244_v18 = vpop.xlane.xlu0 %1243  ;;  %v1765_v38 = vld [vmem:[%s2496_s2 + $0x20] sm:$0xff]  ;;  %v1783_v15 = vld [vmem:[%s2498_s4 + $0x70] sm:$0xff]  ;;  %s1689_s2 = sshll.u32 %s2500_s6, 4  ;;  %s1690_s2 = int_to_ptr.hbm [resolvable:$true] %s1689_s2 }
 0xa06   :  { %1904 = vrcp.f32 %v1244_v18  ;;  %1493 = vmatpush.msra.mxu0 %v1765_v38 }
 0xa07   :  { %1758 = vmatmul.msk.f32.vlgmr.msrb.gmra.mxu2 %vm97_vm1, %v1251_v16  ;;  %v1782_v16 = vld [vmem:[%s2498_s4 + $0x68] sm:$0xff] }
 0xa0c   :  { %v1905_v19 = vpop.eup %1904 }
 0xa0d   :  { %v1250_v20 = vmul.f32 %v1905_v19, %v1889_v4  ;;  %v1376_v21 = vpop.xlane.xlu0 %1375 }
 0xa0e   :  { %1906 = vrcp.f32 %v1376_v21 }
 0xa0f   :  { %1757 = vmatmul.msk.f32.vlgmr.msrb.gmra.mxu1 %vm97_vm1, %v1250_v20  ;;  %v1781_v20 = vld [vmem:[%s2498_s4 + $0x60] sm:$0xff] }
 0xa10   :  { %1614 = vmatpush.msrb.mxu1 %v1784_v14 }
 0xa12   :  { %1615 = vmatpush.msrb.mxu1 %v1783_v15 }
 0xa14   :  { %v1907_v22 = vpop.eup %1906  ;;  %1616 = vmatpush.msrb.mxu1 %v1782_v16 }
 0xa15   :  { %v1382_v23 = vmul.f32 %v1907_v22, %v1891_v11  ;;  %v1379_v24 = vpop.xlane.xlu0 %1378 }
 0xa16   :  { %1908 = vrcp.f32 %v1379_v24  ;;  %v1780_v24 = vld [vmem:[%s2498_s4 + $0x58] sm:$0xff]  ;;  %1617 = vmatpush.msrb.mxu1 %v1781_v20 }
 0xa17   :  { %1763 = vmatmul.msk.f32.vlgmr.msra.gmra.mxu1 %vm97_vm1, %v1382_v23 }
 0xa18   :  { %1618 = vmatpush.msrb.mxu1 %v1780_v24 }
 0xa1c   :  { %v1909_v25 = vpop.eup %1908 }
 0xa1d   :  { %v1383_v26 = vmul.f32 %v1909_v25, %v1893_v50 }
 0xa1f   :  { %1764 = vmatmul.msk.f32.vlgmr.msra.gmra.mxu2 %vm97_vm1, %v1383_v26 }
 0xa61   :  { %v1011_v28 = vpop.f32.mrf.mxu1 }
 0xa74   :  { %v1037_v29 = vpop.f32.mrf.mxu2 }
 0xa7b   :  { %v1143_v30 = vpop.f32.mrf.mxu1 }
 0xa7c   :  { %1438 = vrot.lane.b32.xlu2 %v1143_v30, %s1998_s30 }
 0xa81   :  { %v1169_v31 = vpop.f32.mrf.mxu2 }
 0xa84   :  { %1440 = vrot.lane.b32.xlu2 %v1169_v31, %s1998_s30  ;;  %v1547_v31 = vperm.slane %v2300_v6, 4 }
 0xa8a   :  { %v1301_v33 = vpop.f32.mrf.mxu2 }
 0xa8c   :  { %v1275_v9 = vpop.f32.mrf.mxu1 }
 0xa8d   :  { %1446 = vrot.lane.b32.xlu0 %v1275_v9, %s2011_s26 }
 0xa94   :  { %v1407_v32 = vpop.f32.mrf.mxu1 }
 0xa95   :  { %1454 = vrot.lane.b32.xlu1 %v1407_v32, %s2012_s27 }
 0xa9d   :  { %1448 = vrot.lane.b32.xlu1 %v1301_v33, %s2011_s26 }
 0xaa2   :  { %v1433_v34 = vpop.f32.mrf.mxu2 }
 0xaa3   :  { %1456 = vrot.lane.b32.xlu2 %v1433_v34, %s2012_s27 }
 0xad6   :  { %v1439_v39 = vpop.permute.xlu2 %1438 }
 0xad7   :  { %v1460_v41 = vsel %vm97_vm1, %v1011_v28, %v1439_v39 }
 0xade   :  { %v1441_v44 = vpop.permute.xlu2 %1440 }
 0xadf   :  { %v1461_v46 = vsel %vm97_vm1, %v1037_v29, %v1441_v44 }
 0xafd   :  { %v1457_v11 = vpop.permute.xlu2 %1456 }
 0xaff   :  { %v1447_v40 = vpop.permute.xlu0 %1446 }
 0xb00   :  { %v1462_v42 = vsel %vm647_vm2, %v1460_v41, %v1447_v40 }
 0xb07   :  { %v1455_v4 = vpop.permute.xlu1 %1454 }
 0xb08   :  { %v1464_v45 = vsel %vm650_vm3, %v1462_v42, %v1455_v4 }
 0xb09   :  { %1769 = vmatmul.msk.f32.vlgmr.msra.gmra.mxu0 %vm64_vm0, %v1464_v45  ;;  %v1779_v45 = vld [vmem:[%s2498_s4 + $0x50] sm:$0xff] }
 0xb0a   :  { %1619 = vmatpush.msrb.mxu1 %v1779_v45 }
 0xb0f   :  { %v1449_v5 = vpop.permute.xlu1 %1448 }
 0xb10   :  { %v1463_v47 = vsel %vm647_vm2, %v1461_v46, %v1449_v5  ;;  %v1778_v46 = vld [vmem:[%s2498_s4 + $0x48] sm:$0xff]  ;;  %v1777_v5 = vld [vmem:[%s2498_s4 + $0x40] sm:$0xff]  ;;  %s2014_s4 = smov [#allocation7]  }
 0xb11   :  { %v1465_v48 = vsel %vm650_vm3, %v1463_v47, %v1457_v11  ;;  %1620 = vmatpush.msrb.mxu1 %v1778_v46  ;;  %v1558_v11 = vperm.slane %v2300_v6, 2  ;;  %s1687_s19 = sshll.u32 %s2014_s4, 4  ;;  %s1688_s19 = int_to_ptr.vmem [resolvable:$true] %s1687_s19 }
 0xb12   :  { %1770 = vmatmul.msk.f32.gmra.mxu0 %vm64_vm0, %v1465_v48 }
 0xb13   :  { %1621 = vmatpush.msrb.mxu1 %v1777_v5 }
 0xb86   :  { %v1495_v50 = vpop.f32.mrf.mxu0 }
 0xb87   :  { %v1496_v51 = vadd.f32 %v1495_v50, %v1471_v49 }
 0xb89   :  { %v1501_v52 = vadd.f32 %v1496_v51, %v2292_v17 }
 0xb8b   :  { %v1503_v53 = vsel %vm64_vm0, %v1501_v52, 0.0 }
 0xb8c   :  { %1504 = vadd.xlane.f32.xlu1 %v1503_v53  ;;  %v1599_v53 = vperm.slane %v2300_v6, 3 }
 0xb8f   :  { %v1498_v54 = vpop.f32.mrf.mxu0 }
 0xb90   :  { %v1499_v55 = vadd.f32 %v1498_v54, %v1471_v49 }
 0xb92   :  { %v1502_v56 = vadd.f32 %v1499_v55, %v2296_v27  ;;  %v1774_v27 = vld [vmem:[%s2497_s3 + $0x38] sm:$0xff] }
 0xb93   :  { %1577 = vmatpush.msrb.mxu3 %v1774_v27 }
 0xb94   :  { %v1506_v58 = vsel %vm64_vm0, %v1502_v56, 0.0 }
 0xb95   :  { %1507 = vadd.xlane.f32.xlu0 %v1506_v58  ;;  %1578 = vmatpush.msrb.mxu3 %v1773_v3 }
 0xb97   :  { %1579 = vmatpush.msrb.mxu3 %v1772_v7 }
 0xb99   :  { %1580 = vmatpush.msrb.mxu3 %v1771_v8 }
 0xbff   :  { %v1505_v57 = vpop.xlane.xlu1 %1504 }
 0xc00   :  { %v1509_v59 = vmul.f32 %v1505_v57, %v2218_v43 }
 0xc02   :  { %v1511_v60 = vsub.f32 %v1501_v52, %v1509_v59 }
 0xc04   :  { %v1513_v61 = vmul.f32 %v1511_v60, %v1511_v60 }
 0xc06   :  { %v1515_v62 = vsel %vm64_vm0, %v1513_v61, 0.0 }
 0xc07   :  { %1516 = vadd.xlane.f32.xlu2 %v1515_v62 }
 0xc08   :  { %v1508_v63 = vpop.xlane.xlu0 %1507 }
 0xc09   :  { %v1510_v17 = vmul.f32 %v1508_v63, %v2218_v43 }
 0xc0b   :  { %v1512_v0 = vsub.f32 %v1502_v56, %v1510_v17 }
 0xc0d   :  { %v1514_v1 = vmul.f32 %v1512_v0, %v1512_v0 }
 0xc0f   :  { %v1518_v2 = vsel %vm64_vm0, %v1514_v1, 0.0 }
 0xc10   :  { %1519 = vadd.xlane.f32.xlu1 %v1518_v2 }
 0xc7a   :  { %v1517_v10 = vpop.xlane.xlu2 %1516 }
 0xc7b   :  { %v1521_v12 = vmul.f32 %v1517_v10, %v2218_v43 }
 0xc7d   :  { %v1523_v13 = vadd.f32 1e-05, %v1521_v12 }
 0xc7f   :  { %1910 = vrsqrt.f32 %v1523_v13  ;;  %vm1531_vm2 = vweird.f32 %v1523_v13 }
 0xc83   :  { %v1520_v18 = vpop.xlane.xlu1 %1519 }
 0xc84   :  { %v1522_v19 = vmul.f32 %v1520_v18, %v2218_v43 }
 0xc85   :  { %v1911_v21 = vpop.eup %1910 }
 0xc86   :  { %v1526_v22 = vmul.f32 %v1911_v21, %v1523_v13  ;;  %v1524_v23 = vadd.f32 1e-05, %v1522_v19  ;;  %vm1532_vm1 = vweird.f32 %v1911_v21 }
 0xc87   :  { %vm1533_vm3 = vmor %vm1531_vm2, %vm1532_vm1 }
 0xc88   :  { %v1527_v25 = vmul.f32 %v1911_v21, %v1526_v22  ;;  %1912 = vrsqrt.f32 %v1524_v23  ;;  %vm1541_vm7 = vweird.f32 %v1524_v23 }
 0xc8a   :  { %v1528_v26 = vmul.f32 0.5, %v1527_v25  ;;  %v1675_v25 = vperm.slane %v2300_v6, 6 }
 0xc8c   :  { %v1529_v28 = vsub.f32 1.5, %v1528_v26 }
 0xc8e   :  { %v1913_v29 = vpop.eup %1912  ;;  %v1530_v30 = vmul.f32 %v1911_v21, %v1529_v28 }
 0xc8f   :  { %v1536_v9 = vmul.f32 %v1913_v29, %v1524_v23  ;;  %vm1542_vm6 = vweird.f32 %v1913_v29 }
 0xc90   :  { %v1534_v32 = vsel %vm1533_vm3, %v1911_v21, %v1530_v30  ;;  %vm1543_vm8 = vmor %vm1541_vm7, %vm1542_vm6 }
 0xc91   :  { %v1545_v33 = vmul.f32 %v1534_v32, %v1511_v60  ;;  %v1537_v34 = vmul.f32 %v1913_v29, %v1536_v9 }
 0xc93   :  { %v1548_v36 = vmul.f32 %v1547_v31, %v1545_v33  ;;  %v1538_v37 = vmul.f32 0.5, %v1537_v34 }
 0xc95   :  { %v1539_v38 = vsub.f32 1.5, %v1538_v37  ;;  %v1551_v39 = vadd.f32 %v1550_v35, %v1548_v36 }
 0xc97   :  { %v1540_v40 = vmul.f32 %v1913_v29, %v1539_v38  ;;  %1775 = vmatmul.msk.f32.vlgmr.msrb.gmra.mxu3 %vm64_vm0, %v1551_v39 }
 0xc99   :  { %v1544_v41 = vsel %vm1543_vm8, %v1913_v29, %v1540_v40 }
 0xc9a   :  { %v1546_v42 = vmul.f32 %v1544_v41, %v1512_v0 }
 0xc9c   :  { %v1549_v4 = vmul.f32 %v1547_v31, %v1546_v42 }
 0xc9e   :  { %v1552_v44 = vadd.f32 %v1550_v35, %v1549_v4 }
 0xca0   :  { %1776 = vmatmul.msk.f32.gmra.mxu3 %vm64_vm0, %v1552_v44 }
 0xd1a   :  { %v1582_v47 = vpop.f32.mrf.mxu3 }
 0xd1b   :  { %v1583_v48 = vadd.f32 %v1582_v47, %v1558_v11 }
 0xd1d   :  { %v1588_v49 = vmax.f32 %v1583_v48, 0.0 }
 0xd1f   :  { %1785 = vmatmul.msk.f32.vlgmr.msrb.gmra.mxu1 %vm791_vm11, %v1588_v49 }
 0xd23   :  { %v1585_v50 = vpop.f32.mrf.mxu3 }
 0xd24   :  { %v1586_v51 = vadd.f32 %v1585_v50, %v1558_v11 }
 0xd26   :  { %v1589_v52 = vmax.f32 %v1586_v51, 0.0 }
 0xd28   :  { %1786 = vmatmul.msk.f32.gmra.mxu1 %vm791_vm11, %v1589_v52 }
 0xd9c   :  { %v1623_v54 = vpop.f32.mrf.mxu1 }
 0xd9d   :  { %v1624_v55 = vadd.f32 %v1623_v54, %v1599_v53 }
 0xd9f   :  { %v1629_v56 = vadd.f32 %v1624_v55, %v1551_v39 }
 0xda1   :  { %v1631_v58 = vsel %vm64_vm0, %v1629_v56, 0.0 }
 0xda2   :  { %1632 = vadd.xlane.f32.xlu0 %v1631_v58 }
 0xda5   :  { %v1626_v57 = vpop.f32.mrf.mxu1 }
 0xda6   :  { %v1627_v59 = vadd.f32 %v1626_v57, %v1599_v53 }
 0xda8   :  { %v1630_v60 = vadd.f32 %v1627_v59, %v1552_v44 }
 0xdaa   :  { %v1634_v61 = vsel %vm64_vm0, %v1630_v60, 0.0 }
 0xdab   :  { %1635 = vadd.xlane.f32.xlu2 %v1634_v61 }
 0xe15   :  { %v1633_v62 = vpop.xlane.xlu0 %1632 }
 0xe16   :  { %v1637_v63 = vmul.f32 %v1633_v62, %v2218_v43 }
 0xe18   :  { %v1639_v17 = vsub.f32 %v1629_v56, %v1637_v63 }
 0xe1a   :  { %v1641_v0 = vmul.f32 %v1639_v17, %v1639_v17 }
 0xe1c   :  { %v1643_v1 = vsel %vm64_vm0, %v1641_v0, 0.0 }
 0xe1d   :  { %1644 = vadd.xlane.f32.xlu1 %v1643_v1 }
 0xe1e   :  { %v1636_v2 = vpop.xlane.xlu2 %1635 }
 0xe1f   :  { %v1638_v27 = vmul.f32 %v1636_v2, %v2218_v43 }
 0xe21   :  { %v1640_v3 = vsub.f32 %v1630_v60, %v1638_v27 }
 0xe23   :  { %v1642_v7 = vmul.f32 %v1640_v3, %v1640_v3 }
 0xe25   :  { %v1646_v8 = vsel %vm64_vm0, %v1642_v7, 0.0 }
 0xe26   :  { %1647 = vadd.xlane.f32.xlu0 %v1646_v8 }
 0xe90   :  { %v1645_v10 = vpop.xlane.xlu1 %1644 }
 0xe91   :  { %v1649_v12 = vmul.f32 %v1645_v10, %v2218_v43 }
 0xe93   :  { %v1651_v13 = vadd.f32 1e-05, %v1649_v12 }
 0xe95   :  { %1914 = vrsqrt.f32 %v1651_v13  ;;  %vm1659_vm10 = vweird.f32 %v1651_v13 }
 0xe99   :  { %v1648_v14 = vpop.xlane.xlu0 %1647 }
 0xe9a   :  { %v1650_v15 = vmul.f32 %v1648_v14, %v2218_v43  ;;  %v1678_v43 = vperm.slane %v2300_v6, 7 }
 0xe9b   :  { %v1915_v16 = vpop.eup %1914 }
 0xe9c   :  { %v1654_v18 = vmul.f32 %v1915_v16, %v1651_v13  ;;  %v1652_v19 = vadd.f32 1e-05, %v1650_v15  ;;  %vm1660_vm9 = vweird.f32 %v1915_v16 }
 0xe9d   :  { %vm1661_vm11 = vmor %vm1659_vm10, %vm1660_vm9 }
 0xe9e   :  { %v1655_v20 = vmul.f32 %v1915_v16, %v1654_v18  ;;  %1916 = vrsqrt.f32 %v1652_v19  ;;  %vm1669_vm13 = vweird.f32 %v1652_v19 }
 0xea0   :  { %v1656_v21 = vmul.f32 0.5, %v1655_v20 }
 0xea2   :  { %v1657_v22 = vsub.f32 1.5, %v1656_v21 }
 0xea4   :  { %v1917_v23 = vpop.eup %1916  ;;  %v1658_v24 = vmul.f32 %v1915_v16, %v1657_v22 }
 0xea5   :  { %v1664_v26 = vmul.f32 %v1917_v23, %v1652_v19  ;;  %vm1670_vm12 = vweird.f32 %v1917_v23 }
 0xea6   :  { %v1662_v28 = vsel %vm1661_vm11, %v1915_v16, %v1658_v24  ;;  %vm1671_vm14 = vmor %vm1669_vm13, %vm1670_vm12 }
 0xea7   :  { %v1673_v29 = vmul.f32 %v1662_v28, %v1639_v17  ;;  %v1665_v30 = vmul.f32 %v1917_v23, %v1664_v26 }
 0xea9   :  { %v1676_v31 = vmul.f32 %v1675_v25, %v1673_v29  ;;  %v1666_v9 = vmul.f32 0.5, %v1665_v30 }
 0xeab   :  { %v1667_v32 = vsub.f32 1.5, %v1666_v9  ;;  %v1679_v33 = vadd.f32 %v1678_v43, %v1676_v31 }
 0xead   :  { %v1668_v34 = vmul.f32 %v1917_v23, %v1667_v32  ;;  %1681 = vst.msk [vmem:[#allocation7] sm:$0xff] %vm64_vm0, %v1679_v33 }
 0xeaf   :  { %v1672_v35 = vsel %vm1671_vm14, %v1917_v23, %v1668_v34 }
 0xeb0   :  { %v1674_v36 = vmul.f32 %v1672_v35, %v1640_v3 }
 0xeb2   :  { %v1677_v37 = vmul.f32 %v1675_v25, %v1674_v36 }
 0xeb4   :  { %v1680_v6 = vadd.f32 %v1678_v43, %v1677_v37 }
 0xeb6   :  { %1682 = vst.msk [vmem:[#allocation7 + $0x8] sm:$0xff] %vm64_vm0, %v1680_v6 }
 0xeb7   :  { %1695 = dma.vmem_to_hbm [thread:$0]  %s1688_s19, 256, %s1690_s2, [#allocation4], %s1997_s29, %s1997_s29, %s1998_s30  }
 0xeb8   :  { %1994 = dma.done.wait [#allocation4], 256  }
 0xeb9   :  { %1995 = vsyncadd [#allocation4], 4294967040 }
 0xeba   :  { %1700 = vsyncpa [#allocation3], 1 }
 0xebb   :  { %1701 = vsyncpa [#allocation6], 1 }
 0xebc   :  { %1702 = vsyncpa [#allocation4], 1 }

</bundles_post_ra>
